<compile_context>
chip_gen: v6e
topology: v6e:2x2x1
jax: 0.10.0
libtpu: 0.0.40
codegen_flags: <defaults>
</compile_context>

<pallas_src>
import jax
import jax.numpy as jnp
from jax.experimental import pallas as pl
from jax.experimental.pallas import tpu as pltpu

NUM_CLASSES = 6
CHANNEL_PERM = (0, 2, 3, 4, 5, 1)  # probas[:, [0, 2, 3, 4, 5, 1]]
S_MAX = 512                        # rows of 128 lanes per tile (TILE_N = 65536)


def _round_up(x, m):
    return ((x + m - 1) // m) * m


def _stats_kernel(x_ref, part_ref, acc_ref):
    """Pass 1: per-(batch, split) sum and sum-of-squares.

    x_ref:    (1, C, S, 128) VMEM input tile
    part_ref: (1, 1, 2) SMEM partials output, resident across the tile axis
    acc_ref:  (2, S, 128) f32 VMEM scratch accumulator
    """
    tt = pl.program_id(2)

    @pl.when(tt == 0)
    def _():
        acc_ref[...] = jnp.zeros_like(acc_ref)

    x = x_ref[0].astype(jnp.float32)            # (C, S, 128)
    acc_ref[0] += jnp.sum(x, axis=0)            # dense VALU adds over C
    acc_ref[1] += jnp.sum(x * x, axis=0)

    @pl.when(tt == pl.num_programs(2) - 1)
    def _():
        # Single XLU reduce + scalar store per (batch, split), not per tile.
        part_ref[0, 0, 0] = jnp.sum(acc_ref[0])
        part_ref[0, 0, 1] = jnp.sum(acc_ref[1])


def _make_adapter_kernel(fold_norm, in_dtype):
    """Pass 2: (normalize +) pointwise backbone + softmax + channel permutation."""

    def kernel(stats_ref, w_ref, b_ref, x_ref, out_ref):
        # stats_ref: (B, 2) SMEM  [mean, inv_std]     (only used if not fold_norm)
        # w_ref:     (B, C, 6) SMEM effective weights
        # b_ref:     (B, 6)    SMEM effective bias
        # x_ref:     (1, C, S, 128) VMEM input tile
        # out_ref:   (1, 6, S, 128) VMEM permuted softmax probabilities
        bidx = pl.program_id(0)
        x = x_ref[0].astype(jnp.float32)        # (C, S, 128)

        if fold_norm:
            xn = x                               # normalization folded into w/b
        else:
            mean = stats_ref[bidx, 0]
            inv_std = stats_ref[bidx, 1]
            # torch casts the normalized volume back to the input dtype.
            xn = ((x - mean) * inv_std).astype(in_dtype).astype(jnp.float32)

        num_in = xn.shape[0]

        # Pointwise backbone C -> 6: scalar-broadcast FMAs on the VPU (no MXU).
        logits = []
        for k in range(NUM_CLASSES):
            acc = xn[0] * w_ref[bidx, 0, k]
            for c in range(1, num_in):
                acc = acc + xn[c] * w_ref[bidx, c, k]
            logits.append(acc + b_ref[bidx, k])  # (S, 128)

        # Softmax over the 6 channels: elementwise max / exp across rows.
        m = logits[0]
        for k in range(1, NUM_CLASSES):
            m = jnp.maximum(m, logits[k])

        if out_ref.dtype == jnp.float32:
            # Write exps directly into the output (permuted order), accumulate
            # the denominator on the fly, then rescale the 6 rows in place.
            denom = jnp.zeros_like(m)
            for j, src in enumerate(CHANNEL_PERM):
                e = jnp.exp(logits[src] - m)     # EUP
                denom = denom + e
                out_ref[0, j] = e
            inv = pl.reciprocal(denom, approx=True)     # EUP slot
            inv = inv * (2.0 - denom * inv)             # one Newton step
            for j in range(NUM_CLASSES):
                out_ref[0, j] = out_ref[0, j] * inv
        else:
            # Keep exps in f32 to avoid a narrow-dtype round trip before scaling.
            exps = [jnp.exp(lg - m) for lg in logits]
            denom = exps[0]
            for k in range(1, NUM_CLASSES):
                denom = denom + exps[k]
            inv = pl.reciprocal(denom, approx=True)
            inv = inv * (2.0 - denom * inv)
            for j, src in enumerate(CHANNEL_PERM):
                out_ref[0, j] = (exps[src] * inv).astype(out_ref.dtype)

    return kernel


@jax.jit
def fake_object_detection_adapter(volume, w, b):
    """volume: (B, C, D, H, W).  Returns (probas, fake_offsets) like forward()."""
    B, C, D, H, W = volume.shape
    N = D * H * W

    # Spatial axis -> (rows, 128) dense-vreg layout, padded to a tile multiple.
    R = -(-N // 128)                        # ceil(N / 128)
    if R <= S_MAX:
        S = _round_up(R, 8)
        R_pad = S
    else:
        S = S_MAX
        R_pad = _round_up(R, S)
    nt = R_pad // S
    N_pad = R_pad * 128

    # 'B C D H W -> B C W H D' and its inverse cancel for a pointwise backbone:
    # no HBM transposes, just a reshape (+ zero pad, sliced off at the end).
    x = volume.reshape(B, C, N)
    if N_pad != N:
        x = jnp.pad(x, ((0, 0), (0, 0), (0, N_pad - N)))
    x = x.reshape(B, C, R_pad, 128)

    # ---- pass 1: per-batch sum / sum-of-squares (tiled, VMEM-accumulated) ----
    n_split = 2 if (nt >= 2 and nt % 2 == 0) else 1   # extra parallel axis (v7x)
    nt_inner = nt // n_split

    partials = pl.pallas_call(
        _stats_kernel,
        out_shape=jax.ShapeDtypeStruct((B, n_split, 2), jnp.float32),
        grid=(B, n_split, nt_inner),
        in_specs=[pl.BlockSpec(
            (1, C, S, 128),
            lambda bb, ss, tt: (bb, 0, ss * nt_inner + tt, 0))],
        out_specs=pl.BlockSpec((1, 1, 2), lambda bb, ss, tt: (bb, ss, 0),
                               memory_space=pltpu.MemorySpace.SMEM),
        scratch_shapes=[pltpu.VMEM((2, S, 128), jnp.float32)],
        compiler_params=pltpu.CompilerParams(
            dimension_semantics=("parallel", "parallel", "arbitrary")),
    )(x)

    sums = jnp.sum(partials, axis=1)                  # (B, 2)
    n_elems = jnp.float32(N * C)
    mean = sums[:, 0] / n_elems
    # torch.std defaults to the unbiased (N - 1) estimator.
    var = (sums[:, 1] - n_elems * mean * mean) / (n_elems - 1.0)
    inv_std = jax.lax.rsqrt(var)
    stats = jnp.stack([mean, inv_std], axis=1).astype(jnp.float32)   # (B, 2)

    w32 = w.astype(jnp.float32)
    b32 = b.astype(jnp.float32)
    fold_norm = (volume.dtype == jnp.float32)
    if fold_norm:
        # Fold normalization into per-batch effective weights / bias.
        w_eff = inv_std[:, None, None] * w32[None]                       # (B,C,6)
        b_eff = b32[None, :] - (inv_std * mean)[:, None] * jnp.sum(w32, axis=0)[None, :]
    else:
        w_eff = jnp.broadcast_to(w32[None], (B, C, NUM_CLASSES))
        b_eff = jnp.broadcast_to(b32[None], (B, NUM_CLASSES))

    # ---- pass 2: (normalize +) backbone + softmax + permutation ----
    probas_flat = pl.pallas_call(
        _make_adapter_kernel(fold_norm, volume.dtype),
        out_shape=jax.ShapeDtypeStruct((B, NUM_CLASSES, R_pad, 128), volume.dtype),
        grid=(B, nt),
        in_specs=[
            pl.BlockSpec(memory_space=pltpu.MemorySpace.SMEM),   # stats (B, 2)
            pl.BlockSpec(memory_space=pltpu.MemorySpace.SMEM),   # w_eff (B, C, 6)
            pl.BlockSpec(memory_space=pltpu.MemorySpace.SMEM),   # b_eff (B, 6)
            pl.BlockSpec((1, C, S, 128), lambda bb, tt: (bb, 0, tt, 0)),
        ],
        out_specs=pl.BlockSpec((1, NUM_CLASSES, S, 128),
                               lambda bb, tt: (bb, 0, tt, 0)),
        compiler_params=pltpu.CompilerParams(
            dimension_semantics=("parallel", "parallel")),
    )(stats, w_eff, b_eff, x)

    probas = probas_flat.reshape(B, NUM_CLASSES, N_pad)[:, :, :N].reshape(
        B, NUM_CLASSES, D, H, W)
    fake_offsets = jnp.zeros_like(probas[:, 0:3])                 # (B, 3, D, H, W)
    return probas, fake_offsets


def _reference(volume, w, b):
    """Pure-JAX reference mirroring the PyTorch forward."""
    v = volume.astype(jnp.float32)
    mean = v.mean(axis=(1, 2, 3, 4), keepdims=True)
    std = jnp.std(v, axis=(1, 2, 3, 4), keepdims=True, ddof=1)    # torch unbiased std
    v = ((v - mean) / std).astype(volume.dtype)
    v = jnp.transpose(v, (0, 1, 4, 3, 2))                         # B C W H D
    logits = jnp.einsum("bcwhd,ck->bkwhd", v.astype(jnp.float32), w) + \
        b.reshape(1, NUM_CLASSES, 1, 1, 1)
    probas = jax.nn.softmax(logits, axis=1)
    probas = probas[:, jnp.array(CHANNEL_PERM)]
    probas = jnp.transpose(probas, (0, 1, 4, 3, 2))               # B C D H W
    fake_offsets = jnp.zeros_like(probas[:, 0:3])
    return probas.astype(volume.dtype), fake_offsets


if __name__ == "__main__":
    key = jax.random.PRNGKey(0)
    k_vol, k_w, k_b = jax.random.split(key, 3)

    B, C, D, H, W = 2, 4, 16, 16, 16
    volume = jax.random.normal(k_vol, (B, C, D, H, W), dtype=jnp.float32)

    # deterministic synthetic backbone parameters (1x1x1 conv C -> 6)
    w = jax.random.normal(k_w, (C, NUM_CLASSES), dtype=jnp.float32) * 0.5
    b = jax.random.normal(k_b, (NUM_CLASSES,), dtype=jnp.float32) * 0.1

    probas, fake_offsets = fake_object_detection_adapter(volume, w, b)
    jax.block_until_ready((probas, fake_offsets))

    ref_probas, ref_offsets = _reference(volume, w, b)
    assert probas.shape == (B, NUM_CLASSES, D, H, W)
    assert fake_offsets.shape == (B, 3, D, H, W)
    assert jnp.allclose(probas, ref_probas, rtol=1e-5, atol=1e-5)
    assert jnp.allclose(fake_offsets, ref_offsets)

    print("KERNEL_OK")
</pallas_src>

<mosaic_0001>
module attributes {stable_mosaic.version = 11 : i64} {
  func.func @_stats_kernel(%arg0: i32, %arg1: i32, %arg2: i32, %arg3: memref<1x4x32x128xf32, #tpu.memory_space<vmem>>, %arg4: memref<1x1x2xf32, #tpu.memory_space<smem>>, %arg5: memref<2x32x128xf32, #tpu.memory_space<vmem>>) attributes {dimension_semantics = [#tpu.dimension_semantics<parallel>, #tpu.dimension_semantics<parallel>, #tpu.dimension_semantics<arbitrary>], iteration_bounds = array<i64: 2, 1, 1>, scalar_prefetch = 0 : i64, scratch_operands = 1 : i64, tpu.core_type = #tpu.core_type<tc>, window_params = [{transform_indices = @transform_0, window_bounds = array<i64: 1, 4, 32, 128>}, {transform_indices = @transform_1, window_bounds = array<i64: 1, 1, 2>}]} {
    %c0_i32 = arith.constant 0 : i32
    %0 = arith.cmpi eq, %arg2, %c0_i32 : i32
    %1 = arith.extui %0 : i1 to i32
    %c0_i32_0 = arith.constant 0 : i32
    %2 = arith.cmpi ne, %1, %c0_i32_0 : i32
    scf.if %2 {
      %cst_18 = arith.constant 0.000000e+00 : f32
      %23 = vector.broadcast %cst_18 : f32 to vector<2x32x128xf32>
      %c0_19 = arith.constant 0 : index
      %c0_20 = arith.constant 0 : index
      %c0_21 = arith.constant 0 : index
      %24 = vector.load %arg5[%c0_19, %c0_20, %c0_21] : memref<2x32x128xf32, #tpu.memory_space<vmem>>, vector<2x32x128xf32>
      tpu.vector_store %arg5[%c0_19, %c0_20, %c0_21], %23 {strides = array<i32>} : memref<2x32x128xf32, #tpu.memory_space<vmem>>, vector<2x32x128xf32>,
    } else {
    }
    %c0 = arith.constant 0 : index
    %c0_1 = arith.constant 0 : index
    %c0_2 = arith.constant 0 : index
    %c0_3 = arith.constant 0 : index
    %3 = vector.load %arg3[%c0, %c0_1, %c0_2, %c0_3] : memref<1x4x32x128xf32, #tpu.memory_space<vmem>>, vector<1x4x32x128xf32>
    %4 = vector.shape_cast %3 : vector<1x4x32x128xf32> to vector<4x32x128xf32>
    %c0_4 = arith.constant 0 : index
    %c0_5 = arith.constant 0 : index
    %c0_6 = arith.constant 0 : index
    %5 = vector.load %arg5[%c0_4, %c0_5, %c0_6] : memref<2x32x128xf32, #tpu.memory_space<vmem>>, vector<1x32x128xf32>
    %6 = vector.shape_cast %5 : vector<1x32x128xf32> to vector<32x128xf32>
    %cst = arith.constant dense<0.000000e+00> : vector<32x128xf32>
    %7 = vector.multi_reduction <add>, %4, %cst [0] : vector<4x32x128xf32> to vector<32x128xf32>
    %8 = arith.addf %6, %7 : vector<32x128xf32>
    %c0_7 = arith.constant 0 : index
    %c0_8 = arith.constant 0 : index
    %c0_9 = arith.constant 0 : index
    %9 = vector.load %arg5[%c0_7, %c0_8, %c0_9] : memref<2x32x128xf32, #tpu.memory_space<vmem>>, vector<1x32x128xf32>
    %10 = vector.shape_cast %9 : vector<1x32x128xf32> to vector<32x128xf32>
    %11 = vector.shape_cast %8 : vector<32x128xf32> to vector<1x32x128xf32>
    tpu.vector_store %arg5[%c0_7, %c0_8, %c0_9], %11 {strides = array<i32>} : memref<2x32x128xf32, #tpu.memory_space<vmem>>, vector<1x32x128xf32>,
    %c1 = arith.constant 1 : index
    %c0_10 = arith.constant 0 : index
    %c0_11 = arith.constant 0 : index
    %12 = vector.load %arg5[%c1, %c0_10, %c0_11] : memref<2x32x128xf32, #tpu.memory_space<vmem>>, vector<1x32x128xf32>
    %13 = vector.shape_cast %12 : vector<1x32x128xf32> to vector<32x128xf32>
    %14 = arith.mulf %4, %4 : vector<4x32x128xf32>
    %cst_12 = arith.constant dense<0.000000e+00> : vector<32x128xf32>
    %15 = vector.multi_reduction <add>, %14, %cst_12 [0] : vector<4x32x128xf32> to vector<32x128xf32>
    %16 = arith.addf %13, %15 : vector<32x128xf32>
    %c1_13 = arith.constant 1 : index
    %c0_14 = arith.constant 0 : index
    %c0_15 = arith.constant 0 : index
    %17 = vector.load %arg5[%c1_13, %c0_14, %c0_15] : memref<2x32x128xf32, #tpu.memory_space<vmem>>, vector<1x32x128xf32>
    %18 = vector.shape_cast %17 : vector<1x32x128xf32> to vector<32x128xf32>
    %19 = vector.shape_cast %16 : vector<32x128xf32> to vector<1x32x128xf32>
    tpu.vector_store %arg5[%c1_13, %c0_14, %c0_15], %19 {strides = array<i32>} : memref<2x32x128xf32, #tpu.memory_space<vmem>>, vector<1x32x128xf32>,
    %c0_i32_16 = arith.constant 0 : i32
    %20 = arith.cmpi eq, %arg2, %c0_i32_16 : i32
    %21 = arith.extui %20 : i1 to i32
    %c0_i32_17 = arith.constant 0 : i32
    %22 = arith.cmpi ne, %21, %c0_i32_17 : i32
    scf.if %22 {
      %c0_18 = arith.constant 0 : index
      %c0_19 = arith.constant 0 : index
      %c0_20 = arith.constant 0 : index
      %23 = vector.load %arg5[%c0_18, %c0_19, %c0_20] : memref<2x32x128xf32, #tpu.memory_space<vmem>>, vector<1x32x128xf32>
      %24 = vector.shape_cast %23 : vector<1x32x128xf32> to vector<32x128xf32>
      %25 = vector.shape_cast %24 : vector<32x128xf32> to vector<1x32x128xf32>
      %cst_21 = arith.constant dense<0.000000e+00> : vector<1xf32>
      %26 = vector.multi_reduction <add>, %25, %cst_21 [1, 2] : vector<1x32x128xf32> to vector<1xf32>
      %27 = vector.shape_cast %26 : vector<1xf32> to vector<1x1x1xf32>
      %28 = vector.extract %27[0, 0, 0] : f32 from vector<1x1x1xf32>
      %c0_22 = arith.constant 0 : index
      %c0_23 = arith.constant 0 : index
      %c0_24 = arith.constant 0 : index
      %29 = memref.load %arg4[%c0_22, %c0_23, %c0_24] : memref<1x1x2xf32, #tpu.memory_space<smem>>
      memref.store %28, %arg4[%c0_22, %c0_23, %c0_24] : memref<1x1x2xf32, #tpu.memory_space<smem>>
      %c1_25 = arith.constant 1 : index
      %c0_26 = arith.constant 0 : index
      %c0_27 = arith.constant 0 : index
      %30 = vector.load %arg5[%c1_25, %c0_26, %c0_27] : memref<2x32x128xf32, #tpu.memory_space<vmem>>, vector<1x32x128xf32>
      %31 = vector.shape_cast %30 : vector<1x32x128xf32> to vector<32x128xf32>
      %32 = vector.shape_cast %31 : vector<32x128xf32> to vector<1x32x128xf32>
      %cst_28 = arith.constant dense<0.000000e+00> : vector<1xf32>
      %33 = vector.multi_reduction <add>, %32, %cst_28 [1, 2] : vector<1x32x128xf32> to vector<1xf32>
      %34 = vector.shape_cast %33 : vector<1xf32> to vector<1x1x1xf32>
      %35 = vector.extract %34[0, 0, 0] : f32 from vector<1x1x1xf32>
      %c0_29 = arith.constant 0 : index
      %c0_30 = arith.constant 0 : index
      %c1_31 = arith.constant 1 : index
      %36 = memref.load %arg4[%c0_29, %c0_30, %c1_31] : memref<1x1x2xf32, #tpu.memory_space<smem>>
      memref.store %35, %arg4[%c0_29, %c0_30, %c1_31] : memref<1x1x2xf32, #tpu.memory_space<smem>>
    } else {
    }
    return
  }
  func.func @transform_0(%arg0: i32, %arg1: i32, %arg2: i32) -> (i32, i32, i32, i32) {
    %c1_i32 = arith.constant 1 : i32
    %0 = arith.muli %arg1, %c1_i32 : i32
    %1 = arith.addi %0, %arg2 : i32
    %c0_i32 = arith.constant 0 : i32
    %c0_i32_0 = arith.constant 0 : i32
    %c0_i32_1 = arith.constant 0 : i32
    return %arg0, %c0_i32, %1, %c0_i32_0 : i32, i32, i32, i32
  }
  func.func @transform_1(%arg0: i32, %arg1: i32, %arg2: i32) -> (i32, i32, i32) {
    %c0_i32 = arith.constant 0 : i32
    %c0_i32_0 = arith.constant 0 : i32
    return %arg0, %arg1, %c0_i32 : i32, i32, i32
  }
}

module attributes {stable_mosaic.version = 11 : i64} {
  func.func @kernel(%arg0: i32, %arg1: i32, %arg2: memref<2x2xf32, #tpu.memory_space<smem>>, %arg3: memref<2x4x6xf32, #tpu.memory_space<smem>>, %arg4: memref<2x6xf32, #tpu.memory_space<smem>>, %arg5: memref<1x4x32x128xf32, #tpu.memory_space<vmem>>, %arg6: memref<1x6x32x128xf32, #tpu.memory_space<vmem>>) attributes {dimension_semantics = [#tpu.dimension_semantics<parallel>, #tpu.dimension_semantics<parallel>], iteration_bounds = array<i64: 2, 1>, scalar_prefetch = 0 : i64, scratch_operands = 0 : i64, tpu.core_type = #tpu.core_type<tc>, window_params = [{transform_indices = @transform_0, window_bounds = array<i64: 2, 2>}, {transform_indices = @transform_1, window_bounds = array<i64: 2, 4, 6>}, {transform_indices = @transform_2, window_bounds = array<i64: 2, 6>}, {transform_indices = @transform_3, window_bounds = array<i64: 1, 4, 32, 128>}, {transform_indices = @transform_4, window_bounds = array<i64: 1, 6, 32, 128>}]} {
    %c0 = arith.constant 0 : index
    %c0_0 = arith.constant 0 : index
    %c0_1 = arith.constant 0 : index
    %c0_2 = arith.constant 0 : index
    %0 = vector.load %arg5[%c0, %c0_0, %c0_1, %c0_2] : memref<1x4x32x128xf32, #tpu.memory_space<vmem>>, vector<1x4x32x128xf32>
    %1 = vector.shape_cast %0 : vector<1x4x32x128xf32> to vector<4x32x128xf32>
    %2 = vector.extract_strided_slice %1 {offsets = [0, 0, 0], sizes = [1, 32, 128], strides = [1, 1, 1]} : vector<4x32x128xf32> to vector<1x32x128xf32>
    %3 = vector.shape_cast %2 : vector<1x32x128xf32> to vector<32x128xf32>
    %4 = arith.index_cast %arg0 : i32 to index
    %c0_3 = arith.constant 0 : index
    %c0_4 = arith.constant 0 : index
    %5 = memref.load %arg3[%4, %c0_3, %c0_4] : memref<2x4x6xf32, #tpu.memory_space<smem>>
    %6 = vector.broadcast %5 : f32 to vector<32x128xf32>
    %7 = arith.mulf %3, %6 : vector<32x128xf32>
    %8 = vector.extract_strided_slice %1 {offsets = [1, 0, 0], sizes = [1, 32, 128], strides = [1, 1, 1]} : vector<4x32x128xf32> to vector<1x32x128xf32>
    %9 = vector.shape_cast %8 : vector<1x32x128xf32> to vector<32x128xf32>
    %10 = arith.index_cast %arg0 : i32 to index
    %c1 = arith.constant 1 : index
    %c0_5 = arith.constant 0 : index
    %11 = memref.load %arg3[%10, %c1, %c0_5] : memref<2x4x6xf32, #tpu.memory_space<smem>>
    %12 = vector.broadcast %11 : f32 to vector<32x128xf32>
    %13 = arith.mulf %9, %12 : vector<32x128xf32>
    %14 = arith.addf %7, %13 : vector<32x128xf32>
    %15 = vector.extract_strided_slice %1 {offsets = [2, 0, 0], sizes = [1, 32, 128], strides = [1, 1, 1]} : vector<4x32x128xf32> to vector<1x32x128xf32>
    %16 = vector.shape_cast %15 : vector<1x32x128xf32> to vector<32x128xf32>
    %17 = arith.index_cast %arg0 : i32 to index
    %c2 = arith.constant 2 : index
    %c0_6 = arith.constant 0 : index
    %18 = memref.load %arg3[%17, %c2, %c0_6] : memref<2x4x6xf32, #tpu.memory_space<smem>>
    %19 = vector.broadcast %18 : f32 to vector<32x128xf32>
    %20 = arith.mulf %16, %19 : vector<32x128xf32>
    %21 = arith.addf %14, %20 : vector<32x128xf32>
    %22 = vector.extract_strided_slice %1 {offsets = [3, 0, 0], sizes = [1, 32, 128], strides = [1, 1, 1]} : vector<4x32x128xf32> to vector<1x32x128xf32>
    %23 = vector.shape_cast %22 : vector<1x32x128xf32> to vector<32x128xf32>
    %24 = arith.index_cast %arg0 : i32 to index
    %c3 = arith.constant 3 : index
    %c0_7 = arith.constant 0 : index
    %25 = memref.load %arg3[%24, %c3, %c0_7] : memref<2x4x6xf32, #tpu.memory_space<smem>>
    %26 = vector.broadcast %25 : f32 to vector<32x128xf32>
    %27 = arith.mulf %23, %26 : vector<32x128xf32>
    %28 = arith.addf %21, %27 : vector<32x128xf32>
    %29 = arith.index_cast %arg0 : i32 to index
    %c0_8 = arith.constant 0 : index
    %30 = memref.load %arg4[%29, %c0_8] : memref<2x6xf32, #tpu.memory_space<smem>>
    %31 = vector.broadcast %30 : f32 to vector<32x128xf32>
    %32 = arith.addf %28, %31 : vector<32x128xf32>
    %33 = vector.extract_strided_slice %1 {offsets = [0, 0, 0], sizes = [1, 32, 128], strides = [1, 1, 1]} : vector<4x32x128xf32> to vector<1x32x128xf32>
    %34 = vector.shape_cast %33 : vector<1x32x128xf32> to vector<32x128xf32>
    %35 = arith.index_cast %arg0 : i32 to index
    %c0_9 = arith.constant 0 : index
    %c1_10 = arith.constant 1 : index
    %36 = memref.load %arg3[%35, %c0_9, %c1_10] : memref<2x4x6xf32, #tpu.memory_space<smem>>
    %37 = vector.broadcast %36 : f32 to vector<32x128xf32>
    %38 = arith.mulf %34, %37 : vector<32x128xf32>
    %39 = vector.extract_strided_slice %1 {offsets = [1, 0, 0], sizes = [1, 32, 128], strides = [1, 1, 1]} : vector<4x32x128xf32> to vector<1x32x128xf32>
    %40 = vector.shape_cast %39 : vector<1x32x128xf32> to vector<32x128xf32>
    %41 = arith.index_cast %arg0 : i32 to index
    %c1_11 = arith.constant 1 : index
    %c1_12 = arith.constant 1 : index
    %42 = memref.load %arg3[%41, %c1_11, %c1_12] : memref<2x4x6xf32, #tpu.memory_space<smem>>
    %43 = vector.broadcast %42 : f32 to vector<32x128xf32>
    %44 = arith.mulf %40, %43 : vector<32x128xf32>
    %45 = arith.addf %38, %44 : vector<32x128xf32>
    %46 = vector.extract_strided_slice %1 {offsets = [2, 0, 0], sizes = [1, 32, 128], strides = [1, 1, 1]} : vector<4x32x128xf32> to vector<1x32x128xf32>
    %47 = vector.shape_cast %46 : vector<1x32x128xf32> to vector<32x128xf32>
    %48 = arith.index_cast %arg0 : i32 to index
    %c2_13 = arith.constant 2 : index
    %c1_14 = arith.constant 1 : index
    %49 = memref.load %arg3[%48, %c2_13, %c1_14] : memref<2x4x6xf32, #tpu.memory_space<smem>>
    %50 = vector.broadcast %49 : f32 to vector<32x128xf32>
    %51 = arith.mulf %47, %50 : vector<32x128xf32>
    %52 = arith.addf %45, %51 : vector<32x128xf32>
    %53 = vector.extract_strided_slice %1 {offsets = [3, 0, 0], sizes = [1, 32, 128], strides = [1, 1, 1]} : vector<4x32x128xf32> to vector<1x32x128xf32>
    %54 = vector.shape_cast %53 : vector<1x32x128xf32> to vector<32x128xf32>
    %55 = arith.index_cast %arg0 : i32 to index
    %c3_15 = arith.constant 3 : index
    %c1_16 = arith.constant 1 : index
    %56 = memref.load %arg3[%55, %c3_15, %c1_16] : memref<2x4x6xf32, #tpu.memory_space<smem>>
    %57 = vector.broadcast %56 : f32 to vector<32x128xf32>
    %58 = arith.mulf %54, %57 : vector<32x128xf32>
    %59 = arith.addf %52, %58 : vector<32x128xf32>
    %60 = arith.index_cast %arg0 : i32 to index
    %c1_17 = arith.constant 1 : index
    %61 = memref.load %arg4[%60, %c1_17] : memref<2x6xf32, #tpu.memory_space<smem>>
    %62 = vector.broadcast %61 : f32 to vector<32x128xf32>
    %63 = arith.addf %59, %62 : vector<32x128xf32>
    %64 = vector.extract_strided_slice %1 {offsets = [0, 0, 0], sizes = [1, 32, 128], strides = [1, 1, 1]} : vector<4x32x128xf32> to vector<1x32x128xf32>
    %65 = vector.shape_cast %64 : vector<1x32x128xf32> to vector<32x128xf32>
    %66 = arith.index_cast %arg0 : i32 to index
    %c0_18 = arith.constant 0 : index
    %c2_19 = arith.constant 2 : index
    %67 = memref.load %arg3[%66, %c0_18, %c2_19] : memref<2x4x6xf32, #tpu.memory_space<smem>>
    %68 = vector.broadcast %67 : f32 to vector<32x128xf32>
    %69 = arith.mulf %65, %68 : vector<32x128xf32>
    %70 = vector.extract_strided_slice %1 {offsets = [1, 0, 0], sizes = [1, 32, 128], strides = [1, 1, 1]} : vector<4x32x128xf32> to vector<1x32x128xf32>
    %71 = vector.shape_cast %70 : vector<1x32x128xf32> to vector<32x128xf32>
    %72 = arith.index_cast %arg0 : i32 to index
    %c1_20 = arith.constant 1 : index
    %c2_21 = arith.constant 2 : index
    %73 = memref.load %arg3[%72, %c1_20, %c2_21] : memref<2x4x6xf32, #tpu.memory_space<smem>>
    %74 = vector.broadcast %73 : f32 to vector<32x128xf32>
    %75 = arith.mulf %71, %74 : vector<32x128xf32>
    %76 = arith.addf %69, %75 : vector<32x128xf32>
    %77 = vector.extract_strided_slice %1 {offsets = [2, 0, 0], sizes = [1, 32, 128], strides = [1, 1, 1]} : vector<4x32x128xf32> to vector<1x32x128xf32>
    %78 = vector.shape_cast %77 : vector<1x32x128xf32> to vector<32x128xf32>
    %79 = arith.index_cast %arg0 : i32 to index
    %c2_22 = arith.constant 2 : index
    %c2_23 = arith.constant 2 : index
    %80 = memref.load %arg3[%79, %c2_22, %c2_23] : memref<2x4x6xf32, #tpu.memory_space<smem>>
    %81 = vector.broadcast %80 : f32 to vector<32x128xf32>
    %82 = arith.mulf %78, %81 : vector<32x128xf32>
    %83 = arith.addf %76, %82 : vector<32x128xf32>
    %84 = vector.extract_strided_slice %1 {offsets = [3, 0, 0], sizes = [1, 32, 128], strides = [1, 1, 1]} : vector<4x32x128xf32> to vector<1x32x128xf32>
    %85 = vector.shape_cast %84 : vector<1x32x128xf32> to vector<32x128xf32>
    %86 = arith.index_cast %arg0 : i32 to index
    %c3_24 = arith.constant 3 : index
    %c2_25 = arith.constant 2 : index
    %87 = memref.load %arg3[%86, %c3_24, %c2_25] : memref<2x4x6xf32, #tpu.memory_space<smem>>
    %88 = vector.broadcast %87 : f32 to vector<32x128xf32>
    %89 = arith.mulf %85, %88 : vector<32x128xf32>
    %90 = arith.addf %83, %89 : vector<32x128xf32>
    %91 = arith.index_cast %arg0 : i32 to index
    %c2_26 = arith.constant 2 : index
    %92 = memref.load %arg4[%91, %c2_26] : memref<2x6xf32, #tpu.memory_space<smem>>
    %93 = vector.broadcast %92 : f32 to vector<32x128xf32>
    %94 = arith.addf %90, %93 : vector<32x128xf32>
    %95 = vector.extract_strided_slice %1 {offsets = [0, 0, 0], sizes = [1, 32, 128], strides = [1, 1, 1]} : vector<4x32x128xf32> to vector<1x32x128xf32>
    %96 = vector.shape_cast %95 : vector<1x32x128xf32> to vector<32x128xf32>
    %97 = arith.index_cast %arg0 : i32 to index
    %c0_27 = arith.constant 0 : index
    %c3_28 = arith.constant 3 : index
    %98 = memref.load %arg3[%97, %c0_27, %c3_28] : memref<2x4x6xf32, #tpu.memory_space<smem>>
    %99 = vector.broadcast %98 : f32 to vector<32x128xf32>
    %100 = arith.mulf %96, %99 : vector<32x128xf32>
    %101 = vector.extract_strided_slice %1 {offsets = [1, 0, 0], sizes = [1, 32, 128], strides = [1, 1, 1]} : vector<4x32x128xf32> to vector<1x32x128xf32>
    %102 = vector.shape_cast %101 : vector<1x32x128xf32> to vector<32x128xf32>
    %103 = arith.index_cast %arg0 : i32 to index
    %c1_29 = arith.constant 1 : index
    %c3_30 = arith.constant 3 : index
    %104 = memref.load %arg3[%103, %c1_29, %c3_30] : memref<2x4x6xf32, #tpu.memory_space<smem>>
    %105 = vector.broadcast %104 : f32 to vector<32x128xf32>
    %106 = arith.mulf %102, %105 : vector<32x128xf32>
    %107 = arith.addf %100, %106 : vector<32x128xf32>
    %108 = vector.extract_strided_slice %1 {offsets = [2, 0, 0], sizes = [1, 32, 128], strides = [1, 1, 1]} : vector<4x32x128xf32> to vector<1x32x128xf32>
    %109 = vector.shape_cast %108 : vector<1x32x128xf32> to vector<32x128xf32>
    %110 = arith.index_cast %arg0 : i32 to index
    %c2_31 = arith.constant 2 : index
    %c3_32 = arith.constant 3 : index
    %111 = memref.load %arg3[%110, %c2_31, %c3_32] : memref<2x4x6xf32, #tpu.memory_space<smem>>
    %112 = vector.broadcast %111 : f32 to vector<32x128xf32>
    %113 = arith.mulf %109, %112 : vector<32x128xf32>
    %114 = arith.addf %107, %113 : vector<32x128xf32>
    %115 = vector.extract_strided_slice %1 {offsets = [3, 0, 0], sizes = [1, 32, 128], strides = [1, 1, 1]} : vector<4x32x128xf32> to vector<1x32x128xf32>
    %116 = vector.shape_cast %115 : vector<1x32x128xf32> to vector<32x128xf32>
    %117 = arith.index_cast %arg0 : i32 to index
    %c3_33 = arith.constant 3 : index
    %c3_34 = arith.constant 3 : index
    %118 = memref.load %arg3[%117, %c3_33, %c3_34] : memref<2x4x6xf32, #tpu.memory_space<smem>>
    %119 = vector.broadcast %118 : f32 to vector<32x128xf32>
    %120 = arith.mulf %116, %119 : vector<32x128xf32>
    %121 = arith.addf %114, %120 : vector<32x128xf32>
    %122 = arith.index_cast %arg0 : i32 to index
    %c3_35 = arith.constant 3 : index
    %123 = memref.load %arg4[%122, %c3_35] : memref<2x6xf32, #tpu.memory_space<smem>>
    %124 = vector.broadcast %123 : f32 to vector<32x128xf32>
    %125 = arith.addf %121, %124 : vector<32x128xf32>
    %126 = vector.extract_strided_slice %1 {offsets = [0, 0, 0], sizes = [1, 32, 128], strides = [1, 1, 1]} : vector<4x32x128xf32> to vector<1x32x128xf32>
    %127 = vector.shape_cast %126 : vector<1x32x128xf32> to vector<32x128xf32>
    %128 = arith.index_cast %arg0 : i32 to index
    %c0_36 = arith.constant 0 : index
    %c4 = arith.constant 4 : index
    %129 = memref.load %arg3[%128, %c0_36, %c4] : memref<2x4x6xf32, #tpu.memory_space<smem>>
    %130 = vector.broadcast %129 : f32 to vector<32x128xf32>
    %131 = arith.mulf %127, %130 : vector<32x128xf32>
    %132 = vector.extract_strided_slice %1 {offsets = [1, 0, 0], sizes = [1, 32, 128], strides = [1, 1, 1]} : vector<4x32x128xf32> to vector<1x32x128xf32>
    %133 = vector.shape_cast %132 : vector<1x32x128xf32> to vector<32x128xf32>
    %134 = arith.index_cast %arg0 : i32 to index
    %c1_37 = arith.constant 1 : index
    %c4_38 = arith.constant 4 : index
    %135 = memref.load %arg3[%134, %c1_37, %c4_38] : memref<2x4x6xf32, #tpu.memory_space<smem>>
    %136 = vector.broadcast %135 : f32 to vector<32x128xf32>
    %137 = arith.mulf %133, %136 : vector<32x128xf32>
    %138 = arith.addf %131, %137 : vector<32x128xf32>
    %139 = vector.extract_strided_slice %1 {offsets = [2, 0, 0], sizes = [1, 32, 128], strides = [1, 1, 1]} : vector<4x32x128xf32> to vector<1x32x128xf32>
    %140 = vector.shape_cast %139 : vector<1x32x128xf32> to vector<32x128xf32>
    %141 = arith.index_cast %arg0 : i32 to index
    %c2_39 = arith.constant 2 : index
    %c4_40 = arith.constant 4 : index
    %142 = memref.load %arg3[%141, %c2_39, %c4_40] : memref<2x4x6xf32, #tpu.memory_space<smem>>
    %143 = vector.broadcast %142 : f32 to vector<32x128xf32>
    %144 = arith.mulf %140, %143 : vector<32x128xf32>
    %145 = arith.addf %138, %144 : vector<32x128xf32>
    %146 = vector.extract_strided_slice %1 {offsets = [3, 0, 0], sizes = [1, 32, 128], strides = [1, 1, 1]} : vector<4x32x128xf32> to vector<1x32x128xf32>
    %147 = vector.shape_cast %146 : vector<1x32x128xf32> to vector<32x128xf32>
    %148 = arith.index_cast %arg0 : i32 to index
    %c3_41 = arith.constant 3 : index
    %c4_42 = arith.constant 4 : index
    %149 = memref.load %arg3[%148, %c3_41, %c4_42] : memref<2x4x6xf32, #tpu.memory_space<smem>>
    %150 = vector.broadcast %149 : f32 to vector<32x128xf32>
    %151 = arith.mulf %147, %150 : vector<32x128xf32>
    %152 = arith.addf %145, %151 : vector<32x128xf32>
    %153 = arith.index_cast %arg0 : i32 to index
    %c4_43 = arith.constant 4 : index
    %154 = memref.load %arg4[%153, %c4_43] : memref<2x6xf32, #tpu.memory_space<smem>>
    %155 = vector.broadcast %154 : f32 to vector<32x128xf32>
    %156 = arith.addf %152, %155 : vector<32x128xf32>
    %157 = vector.extract_strided_slice %1 {offsets = [0, 0, 0], sizes = [1, 32, 128], strides = [1, 1, 1]} : vector<4x32x128xf32> to vector<1x32x128xf32>
    %158 = vector.shape_cast %157 : vector<1x32x128xf32> to vector<32x128xf32>
    %159 = arith.index_cast %arg0 : i32 to index
    %c0_44 = arith.constant 0 : index
    %c5 = arith.constant 5 : index
    %160 = memref.load %arg3[%159, %c0_44, %c5] : memref<2x4x6xf32, #tpu.memory_space<smem>>
    %161 = vector.broadcast %160 : f32 to vector<32x128xf32>
    %162 = arith.mulf %158, %161 : vector<32x128xf32>
    %163 = vector.extract_strided_slice %1 {offsets = [1, 0, 0], sizes = [1, 32, 128], strides = [1, 1, 1]} : vector<4x32x128xf32> to vector<1x32x128xf32>
    %164 = vector.shape_cast %163 : vector<1x32x128xf32> to vector<32x128xf32>
    %165 = arith.index_cast %arg0 : i32 to index
    %c1_45 = arith.constant 1 : index
    %c5_46 = arith.constant 5 : index
    %166 = memref.load %arg3[%165, %c1_45, %c5_46] : memref<2x4x6xf32, #tpu.memory_space<smem>>
    %167 = vector.broadcast %166 : f32 to vector<32x128xf32>
    %168 = arith.mulf %164, %167 : vector<32x128xf32>
    %169 = arith.addf %162, %168 : vector<32x128xf32>
    %170 = vector.extract_strided_slice %1 {offsets = [2, 0, 0], sizes = [1, 32, 128], strides = [1, 1, 1]} : vector<4x32x128xf32> to vector<1x32x128xf32>
    %171 = vector.shape_cast %170 : vector<1x32x128xf32> to vector<32x128xf32>
    %172 = arith.index_cast %arg0 : i32 to index
    %c2_47 = arith.constant 2 : index
    %c5_48 = arith.constant 5 : index
    %173 = memref.load %arg3[%172, %c2_47, %c5_48] : memref<2x4x6xf32, #tpu.memory_space<smem>>
    %174 = vector.broadcast %173 : f32 to vector<32x128xf32>
    %175 = arith.mulf %171, %174 : vector<32x128xf32>
    %176 = arith.addf %169, %175 : vector<32x128xf32>
    %177 = vector.extract_strided_slice %1 {offsets = [3, 0, 0], sizes = [1, 32, 128], strides = [1, 1, 1]} : vector<4x32x128xf32> to vector<1x32x128xf32>
    %178 = vector.shape_cast %177 : vector<1x32x128xf32> to vector<32x128xf32>
    %179 = arith.index_cast %arg0 : i32 to index
    %c3_49 = arith.constant 3 : index
    %c5_50 = arith.constant 5 : index
    %180 = memref.load %arg3[%179, %c3_49, %c5_50] : memref<2x4x6xf32, #tpu.memory_space<smem>>
    %181 = vector.broadcast %180 : f32 to vector<32x128xf32>
    %182 = arith.mulf %178, %181 : vector<32x128xf32>
    %183 = arith.addf %176, %182 : vector<32x128xf32>
    %184 = arith.index_cast %arg0 : i32 to index
    %c5_51 = arith.constant 5 : index
    %185 = memref.load %arg4[%184, %c5_51] : memref<2x6xf32, #tpu.memory_space<smem>>
    %186 = vector.broadcast %185 : f32 to vector<32x128xf32>
    %187 = arith.addf %183, %186 : vector<32x128xf32>
    %188 = arith.maximumf %32, %63 : vector<32x128xf32>
    %189 = arith.maximumf %188, %94 : vector<32x128xf32>
    %190 = arith.maximumf %189, %125 : vector<32x128xf32>
    %191 = arith.maximumf %190, %156 : vector<32x128xf32>
    %192 = arith.maximumf %191, %187 : vector<32x128xf32>
    %cst = arith.constant 0.000000e+00 : f32
    %193 = vector.broadcast %cst : f32 to vector<32x128xf32>
    %194 = arith.subf %32, %192 : vector<32x128xf32>
    %195 = math.exp %194 : vector<32x128xf32>
    %196 = arith.addf %193, %195 : vector<32x128xf32>
    %c0_52 = arith.constant 0 : index
    %c0_53 = arith.constant 0 : index
    %c0_54 = arith.constant 0 : index
    %c0_55 = arith.constant 0 : index
    %197 = vector.load %arg6[%c0_52, %c0_53, %c0_54, %c0_55] : memref<1x6x32x128xf32, #tpu.memory_space<vmem>>, vector<1x1x32x128xf32>
    %198 = vector.shape_cast %197 : vector<1x1x32x128xf32> to vector<32x128xf32>
    %199 = vector.shape_cast %195 : vector<32x128xf32> to vector<1x1x32x128xf32>
    tpu.vector_store %arg6[%c0_52, %c0_53, %c0_54, %c0_55], %199 {strides = array<i32>} : memref<1x6x32x128xf32, #tpu.memory_space<vmem>>, vector<1x1x32x128xf32>,
    %200 = arith.subf %94, %192 : vector<32x128xf32>
    %201 = math.exp %200 : vector<32x128xf32>
    %202 = arith.addf %196, %201 : vector<32x128xf32>
    %c0_56 = arith.constant 0 : index
    %c1_57 = arith.constant 1 : index
    %c0_58 = arith.constant 0 : index
    %c0_59 = arith.constant 0 : index
    %203 = vector.load %arg6[%c0_56, %c1_57, %c0_58, %c0_59] : memref<1x6x32x128xf32, #tpu.memory_space<vmem>>, vector<1x1x32x128xf32>
    %204 = vector.shape_cast %203 : vector<1x1x32x128xf32> to vector<32x128xf32>
    %205 = vector.shape_cast %201 : vector<32x128xf32> to vector<1x1x32x128xf32>
    tpu.vector_store %arg6[%c0_56, %c1_57, %c0_58, %c0_59], %205 {strides = array<i32>} : memref<1x6x32x128xf32, #tpu.memory_space<vmem>>, vector<1x1x32x128xf32>,
    %206 = arith.subf %125, %192 : vector<32x128xf32>
    %207 = math.exp %206 : vector<32x128xf32>
    %208 = arith.addf %202, %207 : vector<32x128xf32>
    %c0_60 = arith.constant 0 : index
    %c2_61 = arith.constant 2 : index
    %c0_62 = arith.constant 0 : index
    %c0_63 = arith.constant 0 : index
    %209 = vector.load %arg6[%c0_60, %c2_61, %c0_62, %c0_63] : memref<1x6x32x128xf32, #tpu.memory_space<vmem>>, vector<1x1x32x128xf32>
    %210 = vector.shape_cast %209 : vector<1x1x32x128xf32> to vector<32x128xf32>
    %211 = vector.shape_cast %207 : vector<32x128xf32> to vector<1x1x32x128xf32>
    tpu.vector_store %arg6[%c0_60, %c2_61, %c0_62, %c0_63], %211 {strides = array<i32>} : memref<1x6x32x128xf32, #tpu.memory_space<vmem>>, vector<1x1x32x128xf32>,
    %212 = arith.subf %156, %192 : vector<32x128xf32>
    %213 = math.exp %212 : vector<32x128xf32>
    %214 = arith.addf %208, %213 : vector<32x128xf32>
    %c0_64 = arith.constant 0 : index
    %c3_65 = arith.constant 3 : index
    %c0_66 = arith.constant 0 : index
    %c0_67 = arith.constant 0 : index
    %215 = vector.load %arg6[%c0_64, %c3_65, %c0_66, %c0_67] : memref<1x6x32x128xf32, #tpu.memory_space<vmem>>, vector<1x1x32x128xf32>
    %216 = vector.shape_cast %215 : vector<1x1x32x128xf32> to vector<32x128xf32>
    %217 = vector.shape_cast %213 : vector<32x128xf32> to vector<1x1x32x128xf32>
    tpu.vector_store %arg6[%c0_64, %c3_65, %c0_66, %c0_67], %217 {strides = array<i32>} : memref<1x6x32x128xf32, #tpu.memory_space<vmem>>, vector<1x1x32x128xf32>,
    %218 = arith.subf %187, %192 : vector<32x128xf32>
    %219 = math.exp %218 : vector<32x128xf32>
    %220 = arith.addf %214, %219 : vector<32x128xf32>
    %c0_68 = arith.constant 0 : index
    %c4_69 = arith.constant 4 : index
    %c0_70 = arith.constant 0 : index
    %c0_71 = arith.constant 0 : index
    %221 = vector.load %arg6[%c0_68, %c4_69, %c0_70, %c0_71] : memref<1x6x32x128xf32, #tpu.memory_space<vmem>>, vector<1x1x32x128xf32>
    %222 = vector.shape_cast %221 : vector<1x1x32x128xf32> to vector<32x128xf32>
    %223 = vector.shape_cast %219 : vector<32x128xf32> to vector<1x1x32x128xf32>
    tpu.vector_store %arg6[%c0_68, %c4_69, %c0_70, %c0_71], %223 {strides = array<i32>} : memref<1x6x32x128xf32, #tpu.memory_space<vmem>>, vector<1x1x32x128xf32>,
    %224 = arith.subf %63, %192 : vector<32x128xf32>
    %225 = math.exp %224 : vector<32x128xf32>
    %226 = arith.addf %220, %225 : vector<32x128xf32>
    %c0_72 = arith.constant 0 : index
    %c5_73 = arith.constant 5 : index
    %c0_74 = arith.constant 0 : index
    %c0_75 = arith.constant 0 : index
    %227 = vector.load %arg6[%c0_72, %c5_73, %c0_74, %c0_75] : memref<1x6x32x128xf32, #tpu.memory_space<vmem>>, vector<1x1x32x128xf32>
    %228 = vector.shape_cast %227 : vector<1x1x32x128xf32> to vector<32x128xf32>
    %229 = vector.shape_cast %225 : vector<32x128xf32> to vector<1x1x32x128xf32>
    tpu.vector_store %arg6[%c0_72, %c5_73, %c0_74, %c0_75], %229 {strides = array<i32>} : memref<1x6x32x128xf32, #tpu.memory_space<vmem>>, vector<1x1x32x128xf32>,
    %230 = tpu.reciprocal %226 {approx = true} : vector<32x128xf32> -> vector<32x128xf32>
    %231 = arith.mulf %226, %230 : vector<32x128xf32>
    %cst_76 = arith.constant 2.000000e+00 : f32
    %232 = vector.broadcast %cst_76 : f32 to vector<32x128xf32>
    %233 = arith.subf %232, %231 : vector<32x128xf32>
    %234 = arith.mulf %230, %233 : vector<32x128xf32>
    %c0_77 = arith.constant 0 : index
    %c0_78 = arith.constant 0 : index
    %c0_79 = arith.constant 0 : index
    %c0_80 = arith.constant 0 : index
    %235 = vector.load %arg6[%c0_77, %c0_78, %c0_79, %c0_80] : memref<1x6x32x128xf32, #tpu.memory_space<vmem>>, vector<1x1x32x128xf32>
    %236 = vector.shape_cast %235 : vector<1x1x32x128xf32> to vector<32x128xf32>
    %237 = arith.mulf %236, %234 : vector<32x128xf32>
    %c0_81 = arith.constant 0 : index
    %c0_82 = arith.constant 0 : index
    %c0_83 = arith.constant 0 : index
    %c0_84 = arith.constant 0 : index
    %238 = vector.load %arg6[%c0_81, %c0_82, %c0_83, %c0_84] : memref<1x6x32x128xf32, #tpu.memory_space<vmem>>, vector<1x1x32x128xf32>
    %239 = vector.shape_cast %238 : vector<1x1x32x128xf32> to vector<32x128xf32>
    %240 = vector.shape_cast %237 : vector<32x128xf32> to vector<1x1x32x128xf32>
    tpu.vector_store %arg6[%c0_81, %c0_82, %c0_83, %c0_84], %240 {strides = array<i32>} : memref<1x6x32x128xf32, #tpu.memory_space<vmem>>, vector<1x1x32x128xf32>,
    %c0_85 = arith.constant 0 : index
    %c1_86 = arith.constant 1 : index
    %c0_87 = arith.constant 0 : index
    %c0_88 = arith.constant 0 : index
    %241 = vector.load %arg6[%c0_85, %c1_86, %c0_87, %c0_88] : memref<1x6x32x128xf32, #tpu.memory_space<vmem>>, vector<1x1x32x128xf32>
    %242 = vector.shape_cast %241 : vector<1x1x32x128xf32> to vector<32x128xf32>
    %243 = arith.mulf %242, %234 : vector<32x128xf32>
    %c0_89 = arith.constant 0 : index
    %c1_90 = arith.constant 1 : index
    %c0_91 = arith.constant 0 : index
    %c0_92 = arith.constant 0 : index
    %244 = vector.load %arg6[%c0_89, %c1_90, %c0_91, %c0_92] : memref<1x6x32x128xf32, #tpu.memory_space<vmem>>, vector<1x1x32x128xf32>
    %245 = vector.shape_cast %244 : vector<1x1x32x128xf32> to vector<32x128xf32>
    %246 = vector.shape_cast %243 : vector<32x128xf32> to vector<1x1x32x128xf32>
    tpu.vector_store %arg6[%c0_89, %c1_90, %c0_91, %c0_92], %246 {strides = array<i32>} : memref<1x6x32x128xf32, #tpu.memory_space<vmem>>, vector<1x1x32x128xf32>,
    %c0_93 = arith.constant 0 : index
    %c2_94 = arith.constant 2 : index
    %c0_95 = arith.constant 0 : index
    %c0_96 = arith.constant 0 : index
    %247 = vector.load %arg6[%c0_93, %c2_94, %c0_95, %c0_96] : memref<1x6x32x128xf32, #tpu.memory_space<vmem>>, vector<1x1x32x128xf32>
    %248 = vector.shape_cast %247 : vector<1x1x32x128xf32> to vector<32x128xf32>
    %249 = arith.mulf %248, %234 : vector<32x128xf32>
    %c0_97 = arith.constant 0 : index
    %c2_98 = arith.constant 2 : index
    %c0_99 = arith.constant 0 : index
    %c0_100 = arith.constant 0 : index
    %250 = vector.load %arg6[%c0_97, %c2_98, %c0_99, %c0_100] : memref<1x6x32x128xf32, #tpu.memory_space<vmem>>, vector<1x1x32x128xf32>
    %251 = vector.shape_cast %250 : vector<1x1x32x128xf32> to vector<32x128xf32>
    %252 = vector.shape_cast %249 : vector<32x128xf32> to vector<1x1x32x128xf32>
    tpu.vector_store %arg6[%c0_97, %c2_98, %c0_99, %c0_100], %252 {strides = array<i32>} : memref<1x6x32x128xf32, #tpu.memory_space<vmem>>, vector<1x1x32x128xf32>,
    %c0_101 = arith.constant 0 : index
    %c3_102 = arith.constant 3 : index
    %c0_103 = arith.constant 0 : index
    %c0_104 = arith.constant 0 : index
    %253 = vector.load %arg6[%c0_101, %c3_102, %c0_103, %c0_104] : memref<1x6x32x128xf32, #tpu.memory_space<vmem>>, vector<1x1x32x128xf32>
    %254 = vector.shape_cast %253 : vector<1x1x32x128xf32> to vector<32x128xf32>
    %255 = arith.mulf %254, %234 : vector<32x128xf32>
    %c0_105 = arith.constant 0 : index
    %c3_106 = arith.constant 3 : index
    %c0_107 = arith.constant 0 : index
    %c0_108 = arith.constant 0 : index
    %256 = vector.load %arg6[%c0_105, %c3_106, %c0_107, %c0_108] : memref<1x6x32x128xf32, #tpu.memory_space<vmem>>, vector<1x1x32x128xf32>
    %257 = vector.shape_cast %256 : vector<1x1x32x128xf32> to vector<32x128xf32>
    %258 = vector.shape_cast %255 : vector<32x128xf32> to vector<1x1x32x128xf32>
    tpu.vector_store %arg6[%c0_105, %c3_106, %c0_107, %c0_108], %258 {strides = array<i32>} : memref<1x6x32x128xf32, #tpu.memory_space<vmem>>, vector<1x1x32x128xf32>,
    %c0_109 = arith.constant 0 : index
    %c4_110 = arith.constant 4 : index
    %c0_111 = arith.constant 0 : index
    %c0_112 = arith.constant 0 : index
    %259 = vector.load %arg6[%c0_109, %c4_110, %c0_111, %c0_112] : memref<1x6x32x128xf32, #tpu.memory_space<vmem>>, vector<1x1x32x128xf32>
    %260 = vector.shape_cast %259 : vector<1x1x32x128xf32> to vector<32x128xf32>
    %261 = arith.mulf %260, %234 : vector<32x128xf32>
    %c0_113 = arith.constant 0 : index
    %c4_114 = arith.constant 4 : index
    %c0_115 = arith.constant 0 : index
    %c0_116 = arith.constant 0 : index
    %262 = vector.load %arg6[%c0_113, %c4_114, %c0_115, %c0_116] : memref<1x6x32x128xf32, #tpu.memory_space<vmem>>, vector<1x1x32x128xf32>
    %263 = vector.shape_cast %262 : vector<1x1x32x128xf32> to vector<32x128xf32>
    %264 = vector.shape_cast %261 : vector<32x128xf32> to vector<1x1x32x128xf32>
    tpu.vector_store %arg6[%c0_113, %c4_114, %c0_115, %c0_116], %264 {strides = array<i32>} : memref<1x6x32x128xf32, #tpu.memory_space<vmem>>, vector<1x1x32x128xf32>,
    %c0_117 = arith.constant 0 : index
    %c5_118 = arith.constant 5 : index
    %c0_119 = arith.constant 0 : index
    %c0_120 = arith.constant 0 : index
    %265 = vector.load %arg6[%c0_117, %c5_118, %c0_119, %c0_120] : memref<1x6x32x128xf32, #tpu.memory_space<vmem>>, vector<1x1x32x128xf32>
    %266 = vector.shape_cast %265 : vector<1x1x32x128xf32> to vector<32x128xf32>
    %267 = arith.mulf %266, %234 : vector<32x128xf32>
    %c0_121 = arith.constant 0 : index
    %c5_122 = arith.constant 5 : index
    %c0_123 = arith.constant 0 : index
    %c0_124 = arith.constant 0 : index
    %268 = vector.load %arg6[%c0_121, %c5_122, %c0_123, %c0_124] : memref<1x6x32x128xf32, #tpu.memory_space<vmem>>, vector<1x1x32x128xf32>
    %269 = vector.shape_cast %268 : vector<1x1x32x128xf32> to vector<32x128xf32>
    %270 = vector.shape_cast %267 : vector<32x128xf32> to vector<1x1x32x128xf32>
    tpu.vector_store %arg6[%c0_121, %c5_122, %c0_123, %c0_124], %270 {strides = array<i32>} : memref<1x6x32x128xf32, #tpu.memory_space<vmem>>, vector<1x1x32x128xf32>,
    return
  }
  func.func @transform_0(%arg0: i32, %arg1: i32) -> (i32, i32) {
    %c0_i32 = arith.constant 0 : i32
    %c0_i32_0 = arith.constant 0 : i32
    %c0_i32_1 = arith.constant 0 : i32
    return %c0_i32, %c0_i32_0 : i32, i32
  }
  func.func @transform_1(%arg0: i32, %arg1: i32) -> (i32, i32, i32) {
    %c0_i32 = arith.constant 0 : i32
    %c0_i32_0 = arith.constant 0 : i32
    %c0_i32_1 = arith.constant 0 : i32
    %c0_i32_2 = arith.constant 0 : i32
    return %c0_i32, %c0_i32_0, %c0_i32_1 : i32, i32, i32
  }
  func.func @transform_2(%arg0: i32, %arg1: i32) -> (i32, i32) {
    %c0_i32 = arith.constant 0 : i32
    %c0_i32_0 = arith.constant 0 : i32
    %c0_i32_1 = arith.constant 0 : i32
    return %c0_i32, %c0_i32_0 : i32, i32
  }
  func.func @transform_3(%arg0: i32, %arg1: i32) -> (i32, i32, i32, i32) {
    %c0_i32 = arith.constant 0 : i32
    %c0_i32_0 = arith.constant 0 : i32
    %c0_i32_1 = arith.constant 0 : i32
    return %arg0, %c0_i32, %arg1, %c0_i32_0 : i32, i32, i32, i32
  }
  func.func @transform_4(%arg0: i32, %arg1: i32) -> (i32, i32, i32, i32) {
    %c0_i32 = arith.constant 0 : i32
    %c0_i32_0 = arith.constant 0 : i32
    %c0_i32_1 = arith.constant 0 : i32
    return %arg0, %c0_i32, %arg1, %c0_i32_0 : i32, i32, i32, i32
  }
}

</mosaic_0001>

<bundles_post_ra>
// kernel: fake_object_detection_adapter.2
= control target key start
LH: loop header
LB: loop body
LE: loop exit
PB: predicated region body
PF: predicated region fallthrough
CT: control target
= control target key end

     0   :  { %6 = vsyncpa [#allocation4], 0  ;;  %s620_s0 = inlined_call_operand.vmem [shape: f32[2,4,32,128], index: 0, kind: input, shape index: {}]   ;;  %s621_s1 = inlined_call_operand.vmem [shape: f32[2,1,2], index: 1, kind: output, shape index: {}]  }
   0x1   :  { %8 = vsyncpa [#allocation4 + $0x1], 0  ;;  %s524_s6 = smov 0   ;;  %s526_s7 = smov 0  }
   0x2   :  { %s528_s8 = smov 0   ;;  %s530_s9 = smov 0  }
   0x3   :  { %s532_s10 = smov 0   ;;  %s534_s11 = smov 0  }
   0x4 LB: > { %s382_s12 = sadd.s32 4294967295, %s512_s11   ;;  %s383_s13 = sadd.s32 4294967294, %s512_s11   ;;  %s512_s11 = sphi %s534_s11, %s14_s11   ;;  %s508_s10 = sphi %s532_s10, %s628_s10   ;;  %s504_s9 = sphi %s530_s9, %s627_s9   ;;  %s500_s8 = sphi %s528_s8, %s626_s8   ;;  %s496_s7 = sphi %s526_s7, %s625_s7   ;;  %s492_s6 = sphi %s524_s6, %s624_s6  }
   0x5   : > { %s33_s14 = sadd.s32 1, %s508_s10  ;;  %s72_s15 = sadd.s32 1, %s500_s8 }
   0x6   : > { %p35_p0 = scmp.ge.s32.totalorder %s33_s14, 2  ;;  %p82_p1 = scmp.ne.s32.totalorder %s500_s8, %s496_s7 }
   0x7   : > { %p83_p2 = scmp.eq.s32.totalorder %s382_s12, 1  ;;  %p88_p3 = scmp.ne.s32.totalorder %s496_s7, %s492_s6 }
   0x8   : > { %s630_s14 = smov (%p35_p0, %s33_s14), 0  ;;  %p89_p5 = scmp.eq.s32.totalorder %s383_s13, 1 }
   0x9   : > { %p564_p4 = por %p83_p2, %p82_p1  ;;  %s67_s17 = ssub.s32 %s508_s10, %s630_s14 }
   0xa   : > { %p386_p6 = scmp.ge.s32.totalorder %s512_s11, 1  ;;  %p70_p7 = scmp.eq.s32.totalorder %s67_s17, 0 }
   0xb   : > { %p571_p8 = por %p89_p5, %p88_p3  ;;  %p122_p9 = scmp.lt.s32.totalorder %s512_s11, 3 }
   0xc   : > { %s577_s19 = scalar_select %p70_p7, %s500_s8, %s72_s15  }
   0xd   : > { %p123_p10 = pnand %p386_p6, %p122_p9 }
   0xe   : > { %p149_p11 = scmp.lt.s32.totalorder (!%p123_p10), %s504_s9, 1  ;;  %s144_s25 = sand.u32 (!%p123_p10), 1, %s496_s7  }
   0xf   : > { %126 = sbr.rel (%p123_p10) target bundleno = 247 (0xf7), region = 24  ;;  %s387_s26 = sshll.u32 (!%p123_p10), %s144_s25, 7 }
  0x10   : > { %s303_s29 = scalar_lea.vmem (!%p123_p10), %s621_s1, %s504_s9  ;;  %s146_s2 = scalar_lea.smem (!%p123_p10), [#allocation3], %s387_s26 }
  0x11   : > { %s305_s3 = sshll.u32 (!%p123_p10), %s303_s29, 4  ;;  %s289_s4 = scalar_lea.smem (!%p123_p10), %s146_s2, 1 [#allocation3]  ;;  %s306_s3 = int_to_ptr.vmem [resolvable:$true] %s305_s3 }
  0x12   : > { %s292_s12 = scalar_lea.sflag (!%p123_p10), [#allocation4], %s144_s25  ;;  %s448_s13 = scalar_lea.vmem (!%p123_p10), %s306_s3, 16 }
  0x13   : > { %p449_p12 = scmp.ne.s32.totalorder (!%p123_p10), %s306_s3, %s448_s13 }
  0x14   : > { %s150_s20 = scalar_select %p149_p11, %s504_s9, 1 }
  0x15   : > { %p450_p13 = pnand %p449_p12, %p564_p4 }
  0x16   : > { %s393_s21 = sshll.u32 %s150_s20, 7  ;;  %s452_s20 = sshll.u32 %s621_s1, 4  ;;  %s453_s20 = int_to_ptr.vmem [resolvable:$false] %s452_s20 }
  0x17   : > { %s156_s24 = scalar_lea.vmem %s620_s0, %s393_s21  ;;  %p451_p0 = pneg %p450_p13 }
  0x18   : > { %v171_v0 = vld [vmem:[%s156_s24] sm:$0xff]  ;;  %v172_v1 = vld [vmem:[%s156_s24 + $0x8] sm:$0xff]  ;;  %v173_v2 = vld [vmem:[%s156_s24 + $0x10] sm:$0xff]  ;;  %s454_s9 = scalar_lea.vmem %s453_s20, 32  ;;  %p455_p1 = scmp.lt.s32.totalorder %s306_s3, %s453_s20 }
  0x19   : > { %v174_v3 = vld [vmem:[%s156_s24 + $0x18] sm:$0xff]  ;;  %v175_v4 = vld [vmem:[%s156_s24 + $0x20] sm:$0xff]  ;;  %v176_v5 = vld [vmem:[%s156_s24 + $0x28] sm:$0xff]  ;;  %v216_v6 = vmul.f32 %v171_v0, %v171_v0  ;;  %v217_v12 = vmul.f32 %v172_v1, %v172_v1  ;;  %v218_v13 = vmul.f32 %v173_v2, %v173_v2  ;;  %p456_p2 = scmp.lt.s32.totalorder %s454_s9, %s448_s13 }
  0x1a   : > { %v177_v7 = vld [vmem:[%s156_s24 + $0x30] sm:$0xff]  ;;  %v178_v8 = vld [vmem:[%s156_s24 + $0x38] sm:$0xff]  ;;  %v179_v9 = vld [vmem:[%s156_s24 + $0x40] sm:$0xff]  ;;  %v191_v10 = vadd.f32 %v175_v4, %v171_v0  ;;  %v194_v11 = vadd.f32 %v176_v5, %v172_v1  ;;  %v219_v19 = vmul.f32 %v174_v3, %v174_v3  ;;  %v220_v20 = vmul.f32 %v175_v4, %v175_v4 }
  0x1b   : > { %v180_v14 = vld [vmem:[%s156_s24 + $0x48] sm:$0xff]  ;;  %v181_v15 = vld [vmem:[%s156_s24 + $0x50] sm:$0xff]  ;;  %v182_v16 = vld [vmem:[%s156_s24 + $0x58] sm:$0xff]  ;;  %v197_v17 = vadd.f32 %v177_v7, %v173_v2  ;;  %v200_v18 = vadd.f32 %v178_v8, %v174_v3  ;;  %v221_v26 = vmul.f32 %v176_v5, %v176_v5  ;;  %v222_v27 = vmul.f32 %v177_v7, %v177_v7  ;;  %p457_p3 = por %p456_p2, %p455_p1 }
  0x1c   : > { %v183_v21 = vld [vmem:[%s156_s24 + $0x60] sm:$0xff]  ;;  %v184_v22 = vld [vmem:[%s156_s24 + $0x68] sm:$0xff]  ;;  %v185_v23 = vld [vmem:[%s156_s24 + $0x70] sm:$0xff]  ;;  %v192_v24 = vadd.f32 %v191_v10, %v179_v9  ;;  %v195_v25 = vadd.f32 %v194_v11, %v180_v14  ;;  %v223_v31 = vmul.f32 %v178_v8, %v178_v8  ;;  %v224_v32 = vmul.f32 %v179_v9, %v179_v9 }
  0x1d   : > { %v186_v28 = vld [vmem:[%s156_s24 + $0x78] sm:$0xff]  ;;  %v198_v29 = vadd.f32 %v197_v17, %v181_v15  ;;  %v201_v30 = vadd.f32 %v200_v18, %v182_v16  ;;  %v225_v35 = vmul.f32 %v180_v14, %v180_v14  ;;  %v226_v36 = vmul.f32 %v181_v15, %v181_v15  ;;  %p458_p5 = pnand %p457_p3, %p451_p0 }
  0x1e   : > { %v193_v33 = vadd.f32 %v192_v24, %v183_v21  ;;  %v196_v34 = vadd.f32 %v195_v25, %v184_v22  ;;  %v227_v39 = vmul.f32 %v182_v16, %v182_v16  ;;  %v228_v40 = vmul.f32 %v183_v21, %v183_v21 }
  0x1f   : > { %v199_v37 = vadd.f32 %v198_v29, %v185_v23  ;;  %v202_v38 = vadd.f32 %v201_v30, %v186_v28  ;;  %v229_v41 = vmul.f32 %v184_v22, %v184_v22  ;;  %v232_v43 = vadd.f32 %v220_v20, %v216_v6 }
  0x20   : > { %v259_v42 = vadd.f32 %v196_v34, %v193_v33  ;;  %v235_v44 = vadd.f32 %v221_v26, %v217_v12  ;;  %v230_v45 = vmul.f32 %v185_v23, %v185_v23  ;;  %v238_v46 = vadd.f32 %v222_v27, %v218_v13 }
  0x21   : > { %v241_v47 = vadd.f32 %v223_v31, %v219_v19  ;;  %v231_v48 = vmul.f32 %v186_v28, %v186_v28  ;;  %v233_v50 = vadd.f32 %v232_v43, %v224_v32 }
  0x22   : > { %v260_v49 = vadd.f32 %v259_v42, %v199_v37  ;;  %v236_v51 = vadd.f32 %v235_v44, %v225_v35  ;;  %v239_v52 = vadd.f32 %v238_v46, %v226_v36 }
  0x23   : > { %v242_v53 = vadd.f32 %v241_v47, %v227_v39  ;;  %v234_v55 = vadd.f32 %v233_v50, %v228_v40 }
  0x24   : > { %v261_v54 = vadd.f32 %v260_v49, %v202_v38  ;;  %v237_v56 = vadd.f32 %v236_v51, %v229_v41  ;;  %v240_v57 = vadd.f32 %v239_v52, %v230_v45 }
  0x25   : > { %v243_v58 = vadd.f32 %v242_v53, %v231_v48 }
  0x26   : > { %262 = vadd.xlane.f32.xlu0 %v261_v54  ;;  %v277_v59 = vadd.f32 %v237_v56, %v234_v55 }
  0x28   : > { %v278_v60 = vadd.f32 %v277_v59, %v240_v57 }
  0x2a   : > { %v279_v61 = vadd.f32 %v278_v60, %v243_v58 }
  0x2c   : > { %280 = vadd.xlane.f32.xlu0 %v279_v61 }
  0xaf   : > { %v263_v62 = vpop.xlane.xlu0 %262 }
  0xb0   : > { %v264_v63 = vrot.slane %v263_v62, 4 }
  0xb2   : > { %v265_v0 = vadd.f32 %v264_v63, %v263_v62 }
  0xb4   : > { %v266_v1 = vrot.slane %v265_v0, 2 }
  0xb5   : > { %v281_v2 = vpop.xlane.xlu0 %280 }
  0xb6   : > { %v282_v3 = vrot.slane %v281_v2, 4  ;;  %v267_v4 = vadd.f32 %v266_v1, %v265_v0 }
  0xb8   : > { %v283_v5 = vadd.f32 %v282_v3, %v281_v2  ;;  %v268_v6 = vrot.slane %v267_v4, 1 }
  0xba   : > { %v284_v7 = vrot.slane %v283_v5, 2  ;;  %v269_v8 = vadd.f32 %v268_v6, %v267_v4 }
  0xbc   : > { %v285_v9 = vadd.f32 %v284_v7, %v283_v5  ;;  %394 = vpush %v269_v8 }
  0xbe   : > { %v286_v10 = vrot.slane %v285_v9, 1 }
  0xc0   : > { %v287_v11 = vadd.f32 %v286_v10, %v285_v9 }
  0xc2   : > { %396 = vpush %v287_v11 }
  0xed   : > { %s395_s30 = spop %394 }
  0xee   : > { %272 = sst [smem:[%s146_s2]] %s395_s30 }
  0xf3   : > { %s397_s5 = spop %396 }
  0xf4   : > { %290 = sst [smem:[%s289_s4]] %s397_s5 }
  0xf5   : > { %461 = shalt.err (!%p458_p5)
}
  0xf6   : > { %398 = dma.smem_to_vmem (%p564_p4), %s146_s2, 16, %s306_s3, %s292_s12  }
  0xf7 PF: > { %p392_p6 = scmp.lt.s32.totalorder %s512_s11, 2 }
  0xf8   : > { %s317_s21 = sand.u32 (!%p392_p6), 1, %s492_s6  }
  0xf9   : > { %312 = sbr.rel (%p392_p6) target bundleno = 257 (0x101), region = 40  ;;  %s318_s22 = scalar_lea.sflag (!%p392_p6), [#allocation4], %s317_s21 }
  0xfe   : > { %487 = dma.done.wait (%p571_p8), %s318_s22, 16  }
  0xff   : > { %489 = vsyncadd (%p571_p8), %s318_s22, 4294967280 }
 0x100   : > { %323 = sfence }
 0x101 PF: > { %s14_s11 = sadd.s32 1, %s512_s11   ;;  %s624_s6 = smov %s496_s7 }
 0x102   : > { %p11_p7 = scmp.ge.s32.totalorder %s14_s11, 4   ;;  %s625_s7 = smov %s500_s8 }
 0x103   : > { %s626_s8 = smov %s577_s19  ;;  %s627_s9 = smov %s508_s10 }
 0x104   : > { %s628_s10 = smov %s630_s14  ;;  %13 = sbr.rel (!%p11_p7) target bundleno = 4 (0x4), region = 70 }
 0x109   :  { %324 = vsyncpa [#allocation4], 1 }
 0x10a   :  { %326 = vsyncpa [#allocation4 + $0x1], 1 }

// kernel: fake_object_detection_adapter.3
= control target key start
LH: loop header
LB: loop body
LE: loop exit
PB: predicated region body
PF: predicated region fallthrough
CT: control target
= control target key end

     0   :  { %9 = vsyncpa [#allocation3], 0  ;;  %s1983_s0 = inlined_call_operand.vmem [shape: f32[2,2], index: 0, kind: input, shape index: {}]   ;;  %s1984_s1 = inlined_call_operand.vmem [shape: f32[2,4,6], index: 1, kind: input, shape index: {}]   ;;  %s1985_s2 = inlined_call_operand.vmem [shape: f32[2,6], index: 2, kind: input, shape index: {}]   ;;  %s1986_s3 = inlined_call_operand.vmem [shape: f32[2,4,32,128], index: 3, kind: input, shape index: {}]   ;;  %s1987_s4 = inlined_call_operand.vmem [shape: f32[2,6,32,128], index: 4, kind: output, shape index: {}]  }
   0x1   :  { %10 = vsyncpa [#allocation5], 0  ;;  %s1245_s15 = smov 0   ;;  %s1247_s16 = smov 0  }
   0x2   :  { %s1249_s17 = smov 0  }
   0x3 LB: > { %s175_s20 = sshll.u32 %s1984_s1, 4  ;;  %s931_s21 = sadd.s32 4294967295, %s1213_s17   ;;  %s1213_s17 = sphi %s1249_s17, %s16_s17   ;;  %s1209_s16 = sphi %s1247_s16, %s2016_s16   ;;  %s1205_s15 = sphi %s1245_s15, %s2015_s15   ;;  %s176_s20 = int_to_ptr.vmem [resolvable:$true] %s175_s20 }
   0x4   : > { %p933_p0 = scmp.ge.s32.totalorder %s1213_s17, 1  ;;  %p152_p1 = scmp.lt.s32.totalorder %s1213_s17, 3 }
   0x5   : > { %p1266_p2 = scmp.eq.s32.totalorder %s931_s21, 0  ;;  %s28_s25 = sadd.s32 1, %s1209_s16 }
   0x6   : > { %p1270_p3 = pnand %p933_p0, %p152_p1  ;;  %p1283_p6 = scmp.ge.s32.totalorder %s28_s25, 2 }
   0x7   : > { %s1997_s22 = scalar_select %p1266_p2, 1, 0 }
   0x8   : > { %s1998_s23 = scalar_select %p1270_p3, 1, 0 }
   0x9   : > { %p1037_p4 = pneg %p1270_p3  ;;  %s165_s29 = sshll.u32 %s1983_s0, 4  ;;  %s166_s29 = int_to_ptr.vmem [resolvable:$true] %s165_s29 }
   0xa   : > { %s1138_s30 = scalar_lea.vmem %s176_s20, 128  ;;  %p1146_p11 = scmp.lt.s32.totalorder %s176_s20, %s176_s20 }
   0xb   : > { %p1278_p5 = pnand %p1266_p2, %p1037_p4  ;;  %p1139_p7 = scmp.ne.s32.totalorder %s176_s20, %s1138_s30 }
   0xc   : > { %p1147_p12 = scmp.lt.s32.totalorder %s1138_s30, %s1138_s30 }
   0xd   : > { %p1140_p8 = pneg %p1278_p5 }
   0xe   : > { %p1148_p13 = por %p1147_p12, %p1146_p11 }
   0xf   : > { %p1141_p9 = pnand %p1140_p8, %p1139_p7 }
  0x11   : > { %p1142_p10 = pneg %p1141_p9 }
  0x13   : > { %p1149_p0 = pnand %p1148_p13, %p1142_p10 }
  0x15   : > { %1152 = shalt.err (!%p1149_p0)
}
  0x16   : > { %s1215_s5 = smov [#allocation4]   ;;  %s1216_s6 = smov 64  }
  0x17   : > { %s1217_s7 = smov 4   ;;  %s2018_s25 = smov (%p1283_p6, %s28_s25), 0 }
  0x18   : > { %1043 = dma.vmem_to_smem (!%p1278_p5), %s176_s20, 128, %s1215_s5, [#allocation5], %s1216_s6, %s1216_s6, %s1217_s7  }
  0x19   : > { %s189_s10 = sshll.u32 %s1985_s2, 4  ;;  %s1153_s11 = scalar_lea.vmem %s166_s29, 32  ;;  %s190_s10 = int_to_ptr.vmem [resolvable:$true] %s189_s10 }
  0x1a   : > { %p1154_p1 = scmp.ne.s32.totalorder %s166_s29, %s1153_s11  ;;  %p1161_p9 = scmp.lt.s32.totalorder %s166_s29, %s166_s29 }
  0x1b   : > { %p1162_p10 = scmp.lt.s32.totalorder %s1153_s11, %s1153_s11 }
  0x1c   : > { %p1156_p4 = pnand %p1154_p1, %p1140_p8 }
  0x1d   : > { %p1163_p11 = por %p1162_p10, %p1161_p9 }
  0x1e   : > { %p1157_p7 = pneg %p1156_p4 }
  0x20   : > { %p1164_p12 = pnand %p1163_p11, %p1157_p7 }
  0x22   : > { %1167 = shalt.err (!%p1164_p12)
}
  0x23   : > { %s1218_s12 = smov [#allocation2]   ;;  %s1168_s13 = scalar_lea.vmem %s190_s10, 32 }
  0x24   : > { %1040 = dma.vmem_to_smem (!%p1278_p5), %s166_s29, 32, %s1218_s12, [#allocation3]  }
  0x25   : > { %p1169_p6 = scmp.ne.s32.totalorder %s190_s10, %s1168_s13  ;;  %p1176_p2 = scmp.lt.s32.totalorder %s190_s10, %s190_s10 }
  0x26   : > { %p1177_p1 = scmp.lt.s32.totalorder %s1168_s13, %s1168_s13 }
  0x27   : > { %p1171_p13 = pnand %p1169_p6, %p1140_p8 }
  0x28   : > { %p1178_p4 = por %p1177_p1, %p1176_p2 }
  0x29   : > { %p1172_p0 = pneg %p1171_p13 }
  0x2b   : > { %p1179_p3 = pnand %p1178_p4, %p1172_p0 }
  0x2d   : > { %1182 = shalt.err (!%p1179_p3)
}
  0x2e   : > { %s1219_s14 = smov [#allocation6]   ;;  %p2001_p7 = scmp.ne.s32.totalorder %s1998_s23, 0 }
  0x2f   : > { %1046 = dma.vmem_to_smem (!%p1278_p5), %s190_s10, 32, %s1219_s14, [#allocation5]  }
  0x30   : > { %215 = sbr.rel (%p2001_p7) target bundleno = 200 (0xc8), region = 36 }
  0x35   : > { %p2002_p9 = scmp.ne.s32.totalorder %s1997_s22, 0 }
  0x37   : > { %1196 = dma.done.wait (%p2002_p9), [#allocation3], 32  }
  0x38   : > { %1198 = vsyncadd (%p2002_p9), [#allocation3], 4294967264 }
  0x39   : > { %1200 = dma.done.wait (%p2002_p9), [#allocation5], 160  }
  0x3a   : > { %1202 = vsyncadd (%p2002_p9), [#allocation5], 4294967136 }
  0x3b   : > { %229 = sfence }
  0x3c   : > { %p259_p2 = scmp.lt.s32.totalorder %s1205_s15, 1  ;;  %s1326_s18 = sshll.u32 %s1205_s15, 9 }
  0x3d   : > { %s296_s19 = sld [smem:[#allocation4 + %s1326_s18]]  ;;  %s1330_s20 = sadd.s32 128, %s1326_s18 }
  0x3e   : > { %s1333_s21 = scalar_select %p259_p2, %s1205_s15, 1 }
  0x3f   : > { %s304_s22 = sld [smem:[#allocation4 + %s1330_s20]]  ;;  %s1337_s23 = sadd.s32 256, %s1326_s18 }
  0x40   : > { %s1013_s24 = sshll.u32 %s1333_s21, 7  ;;  %s1346_s29 = sld [smem:[#allocation4 + %s1337_s23]] }
  0x41   : > { %s1343_s28 = scalar_lea.vmem %s1986_s3, %s1013_s24  ;;  %s1352_s30 = sadd.s32 384, %s1326_s18 }
  0x42   : > { %v1349_v0 = vld [vmem:[%s1343_s28] sm:$0xff]  ;;  %s1358_s5 = sld [smem:[#allocation4 + %s1352_s30]]  ;;  %s1361_s6 = sshll.u32 %s1205_s15, 7  ;;  %v1364_v3 = vld [vmem:[%s1343_s28 + $0x8] sm:$0xff]  ;;  %v1376_v7 = vld [vmem:[%s1343_s28 + $0x10] sm:$0xff] }
  0x43   : > { %v1355_v1 = vld [vmem:[%s1343_s28 + $0x20] sm:$0xff]  ;;  %v297_v2 = vstv %s296_s19  ;;  %v1367_v4 = vld [vmem:[%s1343_s28 + $0x28] sm:$0xff]  ;;  %s1371_s7 = sld [smem:[#allocation6 + %s1361_s6]]  ;;  %s345_s8 = sadd.s32 1, %s1326_s18  ;;  %v1388_v11 = vld [vmem:[%s1343_s28 + $0x30] sm:$0xff] }
  0x44   : > { %v298_v5 = vmul.f32 %v297_v2, %v1349_v0  ;;  %v299_v6 = vmul.f32 %v297_v2, %v1364_v3  ;;  %v1379_v8 = vld [vmem:[%s1343_s28 + $0x40] sm:$0xff]  ;;  %s1381_s15 = sld [smem:[#allocation4 + %s345_s8]]  ;;  %s352_s9 = sadd.s32 1, %s1330_s20  ;;  %v1385_v10 = vld [vmem:[%s1343_s28 + $0x48] sm:$0xff]  ;;  %v300_v12 = vmul.f32 %v297_v2, %v1376_v7  ;;  %v1397_v15 = vld [vmem:[%s1343_s28 + $0x50] sm:$0xff] }
  0x45   : > { %v305_v9 = vstv %s304_s22  ;;  %s1392_s10 = sld [smem:[#allocation4 + %s352_s9]]  ;;  %s363_s11 = sadd.s32 1, %s1337_s23  ;;  %v1401_v17 = vld [vmem:[%s1343_s28 + $0x18] sm:$0xff]  ;;  %v1407_v19 = vld [vmem:[%s1343_s28 + $0x60] sm:$0xff]  ;;  %v1423_v25 = vld [vmem:[%s1343_s28 + $0x68] sm:$0xff] }
  0x46   : > { %v306_v13 = vmul.f32 %v305_v9, %v1355_v1  ;;  %v307_v14 = vmul.f32 %v305_v9, %v1367_v4  ;;  %v308_v16 = vmul.f32 %v305_v9, %v1388_v11  ;;  %v1404_v18 = vld [vmem:[%s1343_s28 + $0x38] sm:$0xff]  ;;  %v1410_v20 = vstv %s1346_s29  ;;  %s1412_s12 = sld [smem:[#allocation4 + %s363_s11]]  ;;  %s374_s13 = sadd.s32 1, %s1352_s30  ;;  %v1428_v28 = vld [vmem:[%s1343_s28 + $0x70] sm:$0xff] }
  0x47   : > { %v301_v21 = vmul.f32 %v297_v2, %v1401_v17  ;;  %v309_v22 = vmul.f32 %v305_v9, %v1404_v18  ;;  %v318_v24 = vmul.f32 %v1410_v20, %v1379_v8  ;;  %s1419_s14 = sld [smem:[#allocation4 + %s374_s13]]  ;;  %s385_s19 = sadd.s32 1, %s1361_s6  ;;  %v319_v27 = vmul.f32 %v1410_v20, %v1385_v10 }
  0x48   : > { %v310_v23 = vadd.f32 %v306_v13, %v298_v5  ;;  %v311_v26 = vadd.f32 %v307_v14, %v299_v6  ;;  %v1431_v29 = vstv %s1358_s5  ;;  %s1433_s22 = sld [smem:[#allocation6 + %s385_s19]]  ;;  %s392_s24 = sadd.s32 2, %s1326_s18  ;;  %v312_v30 = vadd.f32 %v308_v16, %v300_v12 }
  0x49   : > { %v320_v31 = vmul.f32 %v1410_v20, %v1397_v15  ;;  %v1438_v32 = vadd.f32 %v309_v22, %v301_v21  ;;  %v330_v34 = vmul.f32 %v1431_v29, %v1407_v19  ;;  %v1443_v35 = vstv %s1371_s7  ;;  %s1445_s26 = sld [smem:[#allocation4 + %s392_s24]]  ;;  %s399_s27 = sadd.s32 2, %s1330_s20 }
  0x4a   : > { %v322_v33 = vadd.f32 %v318_v24, %v310_v23  ;;  %v323_v36 = vadd.f32 %v319_v27, %v311_v26  ;;  %v1449_v37 = vstv %s1381_s15  ;;  %s1451_s29 = sld [smem:[#allocation4 + %s399_s27]]  ;;  %s410_s5 = sadd.s32 2, %s1337_s23  ;;  %v331_v38 = vmul.f32 %v1431_v29, %v1423_v25 }
  0x4b   : > { %v324_v39 = vadd.f32 %v320_v31, %v312_v30  ;;  %v332_v40 = vmul.f32 %v1431_v29, %v1428_v28  ;;  %v348_v42 = vmul.f32 %v1449_v37, %v1349_v0  ;;  %v1461_v43 = vstv %s1392_s10  ;;  %s1463_s7 = sld [smem:[#allocation4 + %s410_s5]]  ;;  %s421_s8 = sadd.s32 2, %s1352_s30 }
  0x4c   : > { %v334_v41 = vadd.f32 %v330_v34, %v322_v33  ;;  %v349_v44 = vmul.f32 %v1449_v37, %v1364_v3  ;;  %v355_v45 = vmul.f32 %v1461_v43, %v1355_v1  ;;  %v1471_v46 = vstv %s1412_s12  ;;  %s1473_s15 = sld [smem:[#allocation4 + %s421_s8]]  ;;  %s432_s9 = sadd.s32 2, %s1361_s6 }
  0x4d   : > { %v335_v47 = vadd.f32 %v331_v38, %v323_v36  ;;  %v356_v48 = vmul.f32 %v1461_v43, %v1367_v4  ;;  %v366_v50 = vmul.f32 %v1471_v46, %v1379_v8  ;;  %v1484_v51 = vstv %s1419_s14  ;;  %s1486_s10 = sld [smem:[#allocation6 + %s432_s9]]  ;;  %s439_s11 = sadd.s32 3, %s1326_s18 }
  0x4e   : > { %v1479_v49 = vadd.f32 %v1443_v35, %v334_v41  ;;  %v367_v52 = vmul.f32 %v1471_v46, %v1385_v10  ;;  %v359_v53 = vadd.f32 %v355_v45, %v348_v42  ;;  %v377_v54 = vmul.f32 %v1484_v51, %v1407_v19  ;;  %s1496_s12 = sld [smem:[#allocation4 + %s439_s11]]  ;;  %s446_s13 = sadd.s32 3, %s1330_s20 }
  0x4f   : > { %v1494_v55 = vstv %s1433_s22  ;;  %v1500_v56 = vadd.f32 %v1443_v35, %v335_v47  ;;  %v1503_v57 = vstv %s1445_s26  ;;  %s1505_s14 = sld [smem:[#allocation4 + %s446_s13]]  ;;  %s457_s19 = sadd.s32 3, %s1337_s23  ;;  %v360_v58 = vadd.f32 %v356_v48, %v349_v44 }
  0x50   : > { %v378_v59 = vmul.f32 %v1484_v51, %v1423_v25  ;;  %v1510_v60 = vadd.f32 %v332_v40, %v324_v39  ;;  %v370_v61 = vadd.f32 %v366_v50, %v359_v53  ;;  %v395_v62 = vmul.f32 %v1503_v57, %v1349_v0  ;;  %s1517_s22 = sld [smem:[#allocation4 + %s457_s19]]  ;;  %s468_s24 = sadd.s32 3, %s1352_s30 }
  0x51   : > { %v1515_v63 = vstv %s1451_s29  ;;  %v396_v2 = vmul.f32 %v1503_v57, %v1364_v3  ;;  %v1525_v6 = vstv %s1463_s7  ;;  %s1527_s26 = sld [smem:[#allocation4 + %s468_s24]]  ;;  %s479_s27 = sadd.s32 3, %s1361_s6  ;;  %v371_v9 = vadd.f32 %v367_v52, %v360_v58 }
  0x52   : > { %v402_v5 = vmul.f32 %v1515_v63, %v1355_v1  ;;  %v403_v12 = vmul.f32 %v1515_v63, %v1367_v4  ;;  %v381_v13 = vadd.f32 %v377_v54, %v370_v61  ;;  %v413_v14 = vmul.f32 %v1525_v6, %v1379_v8  ;;  %s1537_s29 = sld [smem:[#allocation6 + %s479_s27]]  ;;  %s486_s5 = sadd.s32 4, %s1326_s18 }
  0x53   : > { %v1535_v16 = vstv %s1473_s15  ;;  %v414_v21 = vmul.f32 %v1525_v6, %v1385_v10  ;;  %v1545_v24 = vstv %s1486_s10  ;;  %s1547_s7 = sld [smem:[#allocation4 + %s486_s5]]  ;;  %s493_s8 = sadd.s32 4, %s1330_s20  ;;  %v382_v26 = vadd.f32 %v378_v59, %v371_v9 }
  0x54   : > { %v406_v22 = vadd.f32 %v402_v5, %v395_v62  ;;  %v424_v23 = vmul.f32 %v1535_v16, %v1407_v19  ;;  %v1551_v27 = vadd.f32 %v1494_v55, %v381_v13  ;;  %v1554_v30 = vstv %s1496_s12  ;;  %s1556_s15 = sld [smem:[#allocation4 + %s493_s8]]  ;;  %s504_s9 = sadd.s32 4, %s1337_s23 }
  0x55   : > { %v407_v31 = vadd.f32 %v403_v12, %v396_v2  ;;  %v425_v33 = vmul.f32 %v1535_v16, %v1423_v25  ;;  %v442_v36 = vmul.f32 %v1554_v30, %v1349_v0  ;;  %v1564_v38 = vstv %s1505_s14  ;;  %s1566_s10 = sld [smem:[#allocation4 + %s504_s9]]  ;;  %s515_s11 = sadd.s32 4, %s1352_s30 }
  0x56   : > { %2003 = vst [vmem:[#allocation9_spill] sm:$0xff] %v1551_v27  ;;  %v417_v34 = vadd.f32 %v413_v14, %v406_v22  ;;  %v1570_v39 = vadd.f32 %v1494_v55, %v382_v26  ;;  %v449_v40 = vmul.f32 %v1564_v38, %v1355_v1  ;;  %v1575_v41 = vstv %s1517_s22  ;;  %s1577_s12 = sld [smem:[#allocation4 + %s515_s11]]  ;;  %s526_s13 = sadd.s32 4, %s1361_s6 }
  0x57   : > { %v580_v42 = vmax.f32 %v1479_v49, %v1551_v27  ;;  %v418_v44 = vadd.f32 %v414_v21, %v407_v31  ;;  %v460_v47 = vmul.f32 %v1575_v41, %v1379_v8  ;;  %v1585_v48 = vstv %s1527_s26  ;;  %s1587_s14 = sld [smem:[#allocation6 + %s526_s13]]  ;;  %s533_s19 = sadd.s32 5, %s1326_s18 }
  0x58   : > { %2004 = vst [vmem:[#allocation10_spill] sm:$0xff] %v1570_v39  ;;  %v428_v45 = vadd.f32 %v424_v23, %v417_v34  ;;  %v443_v50 = vmul.f32 %v1554_v30, %v1364_v3  ;;  %v453_v52 = vadd.f32 %v449_v40, %v442_v36  ;;  %v471_v53 = vmul.f32 %v1585_v48, %v1407_v19  ;;  %s1597_s22 = sld [smem:[#allocation4 + %s533_s19]]  ;;  %s540_s24 = sadd.s32 5, %s1330_s20 }
  0x59   : > { %v1595_v54 = vstv %s1537_s29  ;;  %v429_v58 = vadd.f32 %v425_v33, %v418_v44  ;;  %v1604_v61 = vstv %s1547_s7  ;;  %s1606_s18 = sld [smem:[#allocation4 + %s540_s24]]  ;;  %s551_s26 = sadd.s32 5, %s1337_s23  ;;  %v450_v62 = vmul.f32 %v1564_v38, %v1367_v4 }
  0x5a   : > { %v1601_v59 = vadd.f32 %v1545_v24, %v428_v45  ;;  %v461_v2 = vmul.f32 %v1575_v41, %v1385_v10  ;;  %v464_v5 = vadd.f32 %v460_v47, %v453_v52  ;;  %v489_v9 = vmul.f32 %v1604_v61, %v1349_v0  ;;  %s552_s20 = sld [smem:[#allocation4 + %s551_s26]]  ;;  %s562_s27 = sadd.s32 5, %s1352_s30 }
  0x5b   : > { %v1616_v12 = vstv %s1556_s15  ;;  %v1620_v13 = vadd.f32 %v1545_v24, %v429_v58  ;;  %v1625_v21 = vstv %s1566_s10  ;;  %s563_s23 = sld [smem:[#allocation4 + %s562_s27]]  ;;  %s573_s29 = sadd.s32 5, %s1361_s6  ;;  %v454_v23 = vadd.f32 %v450_v62, %v443_v50 }
  0x5c   : > { %2005 = vst [vmem:[#allocation11_spill] sm:$0xff] %v1601_v59  ;;  %v496_v14 = vmul.f32 %v1616_v12, %v1355_v1  ;;  %v584_v22 = vmax.f32 %v580_v42, %v1601_v59  ;;  %v475_v26 = vadd.f32 %v471_v53, %v464_v5  ;;  %v507_v31 = vmul.f32 %v1625_v21, %v1379_v8  ;;  %s574_s30 = sld [smem:[#allocation6 + %s573_s29]] }
  0x5d   : > { %v1632_v33 = vstv %s1577_s12  ;;  %v472_v34 = vmul.f32 %v1585_v48, %v1423_v25  ;;  %v1639_v44 = vstv %s1587_s14  ;;  %v465_v45 = vadd.f32 %v461_v2, %v454_v23 }
  0x5e   : > { %v500_v36 = vadd.f32 %v496_v14, %v489_v9  ;;  %v518_v40 = vmul.f32 %v1632_v33, %v1407_v19  ;;  %v1642_v42 = vadd.f32 %v1595_v54, %v475_v26  ;;  %v1645_v47 = vstv %s1597_s22 }
  0x5f   : > { %v490_v50 = vmul.f32 %v1604_v61, %v1364_v3  ;;  %v497_v52 = vmul.f32 %v1616_v12, %v1367_v4  ;;  %v536_v58 = vmul.f32 %v1645_v47, %v1349_v0  ;;  %v1654_v62 = vstv %s1606_s18 }
  0x60   : > { %v511_v53 = vadd.f32 %v507_v31, %v500_v36  ;;  %v476_v5 = vadd.f32 %v472_v34, %v465_v45  ;;  %v543_v2 = vmul.f32 %v1654_v62, %v1355_v1  ;;  %v1658_v9 = vstv %s552_s20 }
  0x61   : > { %v588_v14 = vmax.f32 %v584_v22, %v1642_v42  ;;  %v501_v23 = vadd.f32 %v497_v52, %v490_v50  ;;  %v554_v27 = vmul.f32 %v1658_v9, %v1379_v8  ;;  %v1663_v59 = vstv %s563_s23 }
  0x62   : > { %v522_v26 = vadd.f32 %v518_v40, %v511_v53  ;;  %v1666_v31 = vadd.f32 %v1595_v54, %v476_v5  ;;  %v547_v0 = vadd.f32 %v543_v2, %v536_v58  ;;  %v565_v34 = vmul.f32 %v1663_v59, %v1407_v19 }
  0x63   : > { %v1670_v36 = vstv %s574_s30  ;;  %v508_v1 = vmul.f32 %v1625_v21, %v1385_v10  ;;  %v519_v8 = vmul.f32 %v1632_v33, %v1423_v25  ;;  %v537_v40 = vmul.f32 %v1645_v47, %v1364_v3 }
  0x64   : > { %v1675_v22 = vadd.f32 %v1639_v44, %v522_v26  ;;  %v544_v45 = vmul.f32 %v1654_v62, %v1367_v4  ;;  %v558_v50 = vadd.f32 %v554_v27, %v547_v0  ;;  %v555_v19 = vmul.f32 %v1658_v9, %v1385_v10 }
  0x65   : > { %v512_v52 = vadd.f32 %v508_v1, %v501_v23  ;;  %v566_v53 = vmul.f32 %v1663_v59, %v1423_v25  ;;  %v581_v2 = vmax.f32 %v1500_v56, %v1570_v39  ;;  %v1692_v3 = vadd.f32 %v1443_v35, %v1510_v60 }
  0x66   : > { %v592_v58 = vmax.f32 %v588_v14, %v1675_v22  ;;  %v548_v5 = vadd.f32 %v544_v45, %v537_v40  ;;  %v569_v26 = vadd.f32 %v565_v34, %v558_v50  ;;  %v350_v27 = vmul.f32 %v1449_v37, %v1376_v7 }
  0x67   : > { %v523_v4 = vadd.f32 %v519_v8, %v512_v52  ;;  %v357_v10 = vmul.f32 %v1461_v43, %v1388_v11  ;;  %v585_v25 = vmax.f32 %v581_v2, %v1620_v13  ;;  %v368_v14 = vmul.f32 %v1471_v46, %v1397_v15 }
  0x68   : > { %v559_v23 = vadd.f32 %v555_v19, %v548_v5  ;;  %v379_v0 = vmul.f32 %v1484_v51, %v1428_v28  ;;  %v1704_v60 = vadd.f32 %v1670_v36, %v569_v26  ;;  %v397_v8 = vmul.f32 %v1503_v57, %v1376_v7 }
  0x69   : > { %v1707_v34 = vadd.f32 %v1639_v44, %v523_v4  ;;  %v361_v1 = vadd.f32 %v357_v10, %v350_v27  ;;  %v589_v45 = vmax.f32 %v585_v25, %v1666_v31  ;;  %v404_v50 = vmul.f32 %v1515_v63, %v1388_v11 }
  0x6a   : > { %2006 = vst [vmem:[#allocation12_spill] sm:$0xff] %v1704_v60  ;;  %v570_v40 = vadd.f32 %v566_v53, %v559_v23  ;;  %v415_v52 = vmul.f32 %v1525_v6, %v1397_v15  ;;  %v1717_v19 = vmax.f32 %v592_v58, %v1704_v60  ;;  %v426_v2 = vmul.f32 %v1535_v16, %v1428_v28 }
  0x6b   : > { %2007 = vst [vmem:[#allocation13_spill] sm:$0xff] %v1707_v34  ;;  %v372_v5 = vadd.f32 %v368_v14, %v361_v1  ;;  %v444_v26 = vmul.f32 %v1554_v30, %v1376_v7  ;;  %v593_v4 = vmax.f32 %v589_v45, %v1707_v34  ;;  %v408_v27 = vadd.f32 %v404_v50, %v397_v8 }
  0x6c   : > { %v1724_v53 = vadd.f32 %v1670_v36, %v570_v40  ;;  %v451_v10 = vmul.f32 %v1564_v38, %v1388_v11  ;;  %v600_v58 = vsub.f32 %v1479_v49, %v1717_v19  ;;  %v462_v25 = vmul.f32 %v1575_v41, %v1397_v15 }
  0x6d   : > { %v383_v23 = vadd.f32 %v379_v0, %v372_v5  ;;  %v473_v14 = vmul.f32 %v1585_v48, %v1428_v28  ;;  %v419_v40 = vadd.f32 %v415_v52, %v408_v27  ;;  %v491_v45 = vmul.f32 %v1604_v61, %v1376_v7 }
  0x6e   : > { %2008 = vst [vmem:[#allocation14_spill] sm:$0xff] %v1724_v53  ;;  %v1736_v1 = vmax.f32 %v593_v4, %v1724_v53  ;;  %v455_v8 = vadd.f32 %v451_v10, %v444_v26  ;;  %v604_v50 = vmul.f32 1.442695, %v600_v58  ;;  %v498_v0 = vmul.f32 %v1616_v12, %v1388_v11  ;;  %v293_v53 = vld [vmem:[%s1343_s28 + $0x78] sm:$0xff] }
  0x6f   : > { %v1741_v49 = vadd.f32 %v1494_v55, %v383_v23  ;;  %v509_v5 = vmul.f32 %v1625_v21, %v1397_v15  ;;  %v430_v39 = vadd.f32 %v426_v2, %v419_v40  ;;  %v520_v26 = vmul.f32 %v1632_v33, %v1428_v28  ;;  %v289_v23 = vld [vmem:[%s1343_s28 + $0x58] sm:$0xff]  ;;  %s1024_s28 = smul.u32 192, %s1333_s21 }
  0x70   : > { %v601_v4 = vsub.f32 %v1500_v56, %v1736_v1  ;;  %v466_v52 = vadd.f32 %v462_v25, %v455_v8  ;;  %1082 = vpow2.f32 %v604_v50  ;;  %v502_v27 = vadd.f32 %v498_v0, %v491_v45 }
  0x71   : > { %v538_v10 = vmul.f32 %v1645_v47, %v1376_v7  ;;  %v545_v58 = vmul.f32 %v1654_v62, %v1388_v11  ;;  %v1758_v34 = vadd.f32 %v1545_v24, %v430_v39  ;;  %v556_v2 = vmul.f32 %v1658_v9, %v1397_v15  ;;  %s1927_s7 = scalar_lea.vmem %s1987_s4, %s1024_s28 }
  0x72   : > { %v606_v60 = vmul.f32 1.442695, %v601_v4  ;;  %v477_v56 = vadd.f32 %v473_v14, %v466_v52  ;;  %v513_v25 = vadd.f32 %v509_v5, %v502_v27  ;;  %v567_v8 = vmul.f32 %v1663_v59, %v1428_v28 }
  0x73   : > { %v549_v40 = vadd.f32 %v545_v58, %v538_v10  ;;  %v582_v7 = vmax.f32 %v1692_v3, %v1741_v49  ;;  %v321_v45 = vmul.f32 %v1410_v20, %v289_v23  ;;  %v333_v39 = vmul.f32 %v1431_v29, %v293_v53 }
  0x74   : > { %1084 = vpow2.f32 %v606_v60  ;;  %v1767_v11 = vadd.f32 %v1595_v54, %v477_v56  ;;  %v524_v14 = vadd.f32 %v520_v26, %v513_v25  ;;  %v351_v0 = vmul.f32 %v1449_v37, %v1401_v17 }
  0x75   : > { %v560_v50 = vadd.f32 %v556_v2, %v549_v40  ;;  %v586_v15 = vmax.f32 %v582_v7, %v1758_v34  ;;  %v325_v28 = vadd.f32 %v321_v45, %v1438_v32  ;;  %v358_v5 = vmul.f32 %v1461_v43, %v1404_v18 }
  0x76   : > { %v369_v60 = vmul.f32 %v1471_v46, %v289_v23  ;;  %v380_v4 = vmul.f32 %v1484_v51, %v293_v53  ;;  %v1780_v20 = vadd.f32 %v1639_v44, %v524_v14  ;;  %v398_v26 = vmul.f32 %v1503_v57, %v1401_v17 }
  0x77   : > { %v571_v29 = vadd.f32 %v567_v8, %v560_v50  ;;  %v590_v52 = vmax.f32 %v586_v15, %v1767_v11  ;;  %v337_v27 = vadd.f32 %v333_v39, %v325_v28  ;;  %v362_v37 = vadd.f32 %v358_v5, %v351_v0 }
  0x78   : > { %v405_v32 = vmul.f32 %v1515_v63, %v1404_v18  ;;  %v416_v43 = vmul.f32 %v1525_v6, %v289_v23  ;;  %v427_v10 = vmul.f32 %v1535_v16, %v293_v53  ;;  %v445_v58 = vmul.f32 %v1554_v30, %v1401_v17 }
  0x79   : > { %v1789_v46 = vadd.f32 %v1670_v36, %v571_v29  ;;  %v594_v51 = vmax.f32 %v590_v52, %v1780_v20  ;;  %v1796_v56 = vadd.f32 %v1443_v35, %v337_v27  ;;  %v373_v57 = vadd.f32 %v369_v60, %v362_v37  ;;  %v2009_v60 = vld [vmem:[#allocation11_spill] sm:$0xff] }
  0x7a   : > { %v409_v2 = vadd.f32 %v405_v32, %v398_v26  ;;  %v452_v63 = vmul.f32 %v1564_v38, %v1404_v18  ;;  %v463_v25 = vmul.f32 %v1575_v41, %v289_v23  ;;  %v474_v40 = vmul.f32 %v1585_v48, %v293_v53 }
  0x7b   : > { %v1801_v6 = vmax.f32 %v594_v51, %v1789_v46  ;;  %v492_v16 = vmul.f32 %v1604_v61, %v1401_v17  ;;  %v384_v8 = vadd.f32 %v380_v4, %v373_v57  ;;  %v499_v35 = vmul.f32 %v1616_v12, %v1404_v18 }
  0x7c   : > { %v420_v30 = vadd.f32 %v416_v43, %v409_v2  ;;  %v456_v7 = vadd.f32 %v452_v63, %v445_v58  ;;  %v510_v38 = vmul.f32 %v1625_v21, %v289_v23  ;;  %v521_v39 = vmul.f32 %v1632_v33, %v293_v53  ;;  %v2010_v58 = vld [vmem:[#allocation13_spill] sm:$0xff] }
  0x7d   : > { %v602_v45 = vsub.f32 %v1692_v3, %v1801_v6  ;;  %v539_v41 = vmul.f32 %v1645_v47, %v1401_v17  ;;  %v1815_v48 = vpop.eup %1082  ;;  %v1818_v61 = vadd.f32 %v1494_v55, %v384_v8  ;;  %v503_v15 = vadd.f32 %v499_v35, %v492_v16 }
  0x7e   : > { %v431_v14 = vadd.f32 %v427_v10, %v420_v30  ;;  %v467_v50 = vadd.f32 %v463_v25, %v456_v7  ;;  %v546_v12 = vmul.f32 %v1654_v62, %v1404_v18  ;;  %v557_v3 = vmul.f32 %v1658_v9, %v289_v23 }
  0x7f   : > { %v608_v0 = vmul.f32 1.442695, %v602_v45  ;;  %v568_v21 = vmul.f32 %v1663_v59, %v293_v53  ;;  %v514_v17 = vadd.f32 %v510_v38, %v503_v15  ;;  %v583_v47 = vmax.f32 %v1796_v56, %v1818_v61 }
  0x80   : > { %v438_v33 = vadd.f32 %v1545_v24, %v431_v14  ;;  %v478_v28 = vadd.f32 %v474_v40, %v467_v50  ;;  %v550_v5 = vadd.f32 %v546_v12, %v539_v41  ;;  %v620_v4 = vsub.f32 %v2009_v60, %v1717_v19 }
  0x81   : > { %v1827_v55 = vpop.eup %1084  ;;  %1086 = vpow2.f32 %v608_v0  ;;  %v621_v18 = vsub.f32 %v1620_v13, %v1736_v1  ;;  %v525_v59 = vadd.f32 %v521_v39, %v514_v17  ;;  %v622_v24 = vsub.f32 %v1758_v34, %v1801_v6  ;;  %v2013_v0 = vld [vmem:[#allocation9_spill] sm:$0xff] }
  0x82   : > { %v485_v62 = vadd.f32 %v1595_v54, %v478_v28  ;;  %v587_v9 = vmax.f32 %v583_v47, %v438_v33  ;;  %v561_v53 = vadd.f32 %v557_v3, %v550_v5  ;;  %v624_v23 = vmul.f32 1.442695, %v620_v4  ;;  %v2014_v3 = vld [vmem:[#allocation10_spill] sm:$0xff] }
  0x83   : > { %v626_v29 = vmul.f32 1.442695, %v621_v18  ;;  %v641_v52 = vsub.f32 %v1642_v42, %v1717_v19  ;;  %v532_v26 = vadd.f32 %v1639_v44, %v525_v59  ;;  %v628_v37 = vmul.f32 1.442695, %v622_v24 }
  0x84   : > { %v591_v27 = vmax.f32 %v587_v9, %v485_v62  ;;  %v642_v13 = vsub.f32 %v1666_v31, %v1736_v1  ;;  %v572_v32 = vadd.f32 %v568_v21, %v561_v53  ;;  %1088 = vpow2.f32 %v624_v23 }
  0x85   : > { %v645_v54 = vmul.f32 1.442695, %v641_v52  ;;  %v643_v43 = vsub.f32 %v1767_v11, %v1801_v6  ;;  %1090 = vpow2.f32 %v626_v29  ;;  %v662_v10 = vsub.f32 %v1675_v22, %v1717_v19  ;;  %v2011_v11 = vld [vmem:[#allocation12_spill] sm:$0xff] }
  0x86   : > { %v595_v34 = vmax.f32 %v591_v27, %v532_v26  ;;  %v647_v51 = vmul.f32 1.442695, %v642_v13  ;;  %v579_v42 = vadd.f32 %v1670_v36, %v572_v32  ;;  %1092 = vpow2.f32 %v628_v37  ;;  %v2012_v36 = vld [vmem:[#allocation14_spill] sm:$0xff] }
  0x87   : > { %v649_v44 = vmul.f32 1.442695, %v643_v43  ;;  %v663_v57 = vsub.f32 %v2010_v58, %v1736_v1  ;;  %1094 = vpow2.f32 %v645_v54  ;;  %v666_v31 = vmul.f32 1.442695, %v662_v10 }
  0x88   : > { %v664_v2 = vsub.f32 %v1780_v20, %v1801_v6  ;;  %v683_v63 = vsub.f32 %v2011_v11, %v1717_v19  ;;  %v599_v25 = vmax.f32 %v595_v34, %v579_v42  ;;  %1096 = vpow2.f32 %v647_v51 }
  0x89   : > { %v668_v40 = vmul.f32 1.442695, %v663_v57  ;;  %1098 = vpow2.f32 %v649_v44  ;;  %v684_v8 = vsub.f32 %v2012_v36, %v1736_v1  ;;  %v685_v20 = vsub.f32 %v1789_v46, %v1801_v6 }
  0x8a   : > { %v670_v22 = vmul.f32 1.442695, %v664_v2  ;;  %v687_v16 = vmul.f32 1.442695, %v683_v63  ;;  %v603_v30 = vsub.f32 %v1796_v56, %v599_v25  ;;  %v623_v7 = vsub.f32 %v438_v33, %v599_v25 }
  0x8b   : > { %v644_v35 = vsub.f32 %v485_v62, %v599_v25  ;;  %1100 = vpow2.f32 %v666_v31  ;;  %v665_v45 = vsub.f32 %v532_v26, %v599_v25  ;;  %v686_v15 = vsub.f32 %v579_v42, %v599_v25 }
  0x8c   : > { %1102 = vpow2.f32 %v668_v40  ;;  %v610_v38 = vmul.f32 1.442695, %v603_v30  ;;  %v630_v39 = vmul.f32 1.442695, %v623_v7  ;;  %v704_v56 = vsub.f32 %v2013_v0, %v1717_v19 }
  0x8d   : > { %v651_v41 = vmul.f32 1.442695, %v644_v35  ;;  %1104 = vpow2.f32 %v670_v22  ;;  %v672_v50 = vmul.f32 1.442695, %v665_v45  ;;  %v689_v12 = vmul.f32 1.442695, %v684_v8 }
  0x8e   : > { %v1857_v14 = vpop.eup %1086  ;;  %1106 = vpow2.f32 %v687_v16  ;;  %v705_v21 = vsub.f32 %v2014_v3, %v1736_v1  ;;  %v691_v33 = vmul.f32 1.442695, %v685_v20  ;;  %v706_v46 = vsub.f32 %v1741_v49, %v1801_v6 }
  0x8f   : > { %1108 = vpow2.f32 %v610_v38  ;;  %v693_v28 = vmul.f32 1.442695, %v686_v15  ;;  %v707_v17 = vsub.f32 %v1818_v61, %v599_v25  ;;  %v708_v5 = vmul.f32 1.442695, %v704_v56 }
  0x90   : > { %1110 = vpow2.f32 %v630_v39  ;;  %v710_v19 = vmul.f32 1.442695, %v705_v21  ;;  %v712_v18 = vmul.f32 1.442695, %v706_v46 }
  0x91   : > { %1112 = vpow2.f32 %v651_v41  ;;  %v1866_v47 = vpop.eup %1088  ;;  %v714_v61 = vmul.f32 1.442695, %v707_v17 }
  0x92   : > { %1114 = vpow2.f32 %v672_v50  ;;  %v1868_v60 = vpop.eup %1090  ;;  %v632_v1 = vadd.f32 %v1866_v47, %v1815_v48 }
  0x93   : > { %1116 = vpow2.f32 %v689_v12  ;;  %v1870_v4 = vpop.eup %1092  ;;  %v633_v6 = vadd.f32 %v1868_v60, %v1827_v55 }
  0x94   : > { %1118 = vpow2.f32 %v691_v33  ;;  %v1874_v49 = vpop.eup %1094  ;;  %v634_v59 = vadd.f32 %v1870_v4, %v1857_v14 }
  0x95   : > { %1120 = vpow2.f32 %v693_v28  ;;  %v1878_v62 = vpop.eup %1096  ;;  %v653_v53 = vadd.f32 %v1874_v49, %v632_v1 }
  0x96   : > { %1122 = vpow2.f32 %v708_v5  ;;  %v1882_v9 = vpop.eup %1098  ;;  %v654_v29 = vadd.f32 %v1878_v62, %v633_v6 }
  0x97   : > { %1124 = vpow2.f32 %v710_v19  ;;  %v655_v26 = vadd.f32 %v1882_v9, %v634_v59 }
  0x98   : > { %v1884_v24 = vpop.eup %1100  ;;  %1126 = vpow2.f32 %v712_v18 }
  0x99   : > { %v1887_v23 = vpop.eup %1102  ;;  %1128 = vpow2.f32 %v714_v61  ;;  %v674_v13 = vadd.f32 %v1884_v24, %v653_v53 }
  0x9a   : > { %v1890_v52 = vpop.eup %1104  ;;  %v675_v54 = vadd.f32 %v1887_v23, %v654_v29 }
  0x9b   : > { %v1893_v27 = vpop.eup %1106  ;;  %v676_v51 = vadd.f32 %v1890_v52, %v655_v26 }
  0x9c   : > { %v1109_v37 = vpop.eup %1108  ;;  %v695_v58 = vadd.f32 %v1893_v27, %v674_v13 }
  0x9d   : > { %v1111_v32 = vpop.eup %1110 }
  0x9e   : > { %v1113_v43 = vpop.eup %1112  ;;  %v635_v34 = vadd.f32 %v1111_v32, %v1109_v37 }
  0x9f   : > { %v1898_v10 = vpop.eup %1114 }
  0xa0   : > { %v1900_v42 = vpop.eup %1116  ;;  %v656_v44 = vadd.f32 %v1113_v43, %v635_v34 }
  0xa1   : > { %v1903_v57 = vpop.eup %1118  ;;  %v696_v31 = vadd.f32 %v1900_v42, %v675_v54 }
  0xa2   : > { %v1906_v2 = vpop.eup %1120  ;;  %v677_v11 = vadd.f32 %v1898_v10, %v656_v44  ;;  %v697_v63 = vadd.f32 %v1903_v57, %v676_v51 }
  0xa3   : > { %v1910_v25 = vpop.eup %1122 }
  0xa4   : > { %v1912_v40 = vpop.eup %1124  ;;  %v698_v22 = vadd.f32 %v1906_v2, %v677_v11  ;;  %v716_v16 = vadd.f32 %v1910_v25, %v695_v58 }
  0xa5   : > { %v1916_v36 = vpop.eup %1126  ;;  %v717_v8 = vadd.f32 %v1912_v40, %v696_v31 }
  0xa6   : > { %v1919_v30 = vpop.eup %1128  ;;  %1130 = vrcp.f32 %v716_v16  ;;  %v718_v7 = vadd.f32 %v1916_v36, %v697_v63 }
  0xa7   : > { %1132 = vrcp.f32 %v717_v8  ;;  %v719_v35 = vadd.f32 %v1919_v30, %v698_v22 }
  0xa8   : > { %1134 = vrcp.f32 %v718_v7 }
  0xa9   : > { %1136 = vrcp.f32 %v719_v35 }
  0xb3   : > { %v1131_v45 = vpop.eup %1130 }
  0xb4   : > { %v1133_v20 = vpop.eup %1132  ;;  %v729_v38 = vmul.f32 %v1131_v45, %v716_v16 }
  0xb5   : > { %v1135_v39 = vpop.eup %1134  ;;  %v730_v41 = vmul.f32 %v1133_v20, %v717_v8 }
  0xb6   : > { %v1137_v50 = vpop.eup %1136  ;;  %v733_v15 = vsub.f32 2.0, %v729_v38  ;;  %v731_v0 = vmul.f32 %v1135_v39, %v718_v7 }
  0xb7   : > { %v734_v56 = vsub.f32 2.0, %v730_v41  ;;  %v732_v12 = vmul.f32 %v1137_v50, %v719_v35 }
  0xb8   : > { %v737_v3 = vmul.f32 %v1131_v45, %v733_v15  ;;  %v735_v21 = vsub.f32 2.0, %v731_v0 }
  0xb9   : > { %v738_v33 = vmul.f32 %v1133_v20, %v734_v56  ;;  %v736_v46 = vsub.f32 2.0, %v732_v12 }
  0xba   : > { %v745_v28 = vmul.f32 %v1815_v48, %v737_v3  ;;  %v739_v17 = vmul.f32 %v1135_v39, %v735_v21  ;;  %v757_v5 = vmul.f32 %v1866_v47, %v737_v3  ;;  %v769_v19 = vmul.f32 %v1874_v49, %v737_v3 }
  0xbb   : > { %v746_v1 = vmul.f32 %v1827_v55, %v738_v33  ;;  %v740_v18 = vmul.f32 %v1137_v50, %v736_v46  ;;  %v758_v6 = vmul.f32 %v1868_v60, %v738_v33  ;;  %v770_v61 = vmul.f32 %v1878_v62, %v738_v33 }
  0xbc   : > { %749 = vst [vmem:[%s1927_s7] sm:$0xff] %v745_v28  ;;  %v747_v48 = vmul.f32 %v1857_v14, %v739_v17  ;;  %975 = vst [vmem:[%s1927_s7 + $0x20] sm:$0xff] %v757_v5  ;;  %v759_v47 = vmul.f32 %v1870_v4, %v739_v17  ;;  %v771_v49 = vmul.f32 %v1882_v9, %v739_v17 }
  0xbd   : > { %983 = vst [vmem:[%s1927_s7 + $0x40] sm:$0xff] %v769_v19  ;;  %v781_v55 = vmul.f32 %v1884_v24, %v737_v3  ;;  %750 = vst [vmem:[%s1927_s7 + $0x8] sm:$0xff] %v746_v1  ;;  %v748_v60 = vmul.f32 %v1109_v37, %v740_v18  ;;  %v760_v62 = vmul.f32 %v1111_v32, %v740_v18 }
  0xbe   : > { %976 = vst [vmem:[%s1927_s7 + $0x28] sm:$0xff] %v758_v6  ;;  %984 = vst [vmem:[%s1927_s7 + $0x48] sm:$0xff] %v770_v61  ;;  %v772_v59 = vmul.f32 %v1113_v43, %v740_v18  ;;  %v782_v14 = vmul.f32 %v1887_v23, %v738_v33  ;;  %v783_v4 = vmul.f32 %v1890_v52, %v739_v17 }
  0xbf   : > { %751 = vst [vmem:[%s1927_s7 + $0x10] sm:$0xff] %v747_v48  ;;  %977 = vst [vmem:[%s1927_s7 + $0x30] sm:$0xff] %v759_v47  ;;  %v784_v9 = vmul.f32 %v1898_v10, %v740_v18  ;;  %v793_v24 = vmul.f32 %v1893_v27, %v737_v3  ;;  %v794_v53 = vmul.f32 %v1900_v42, %v738_v33 }
  0xc0   : > { %985 = vst [vmem:[%s1927_s7 + $0x50] sm:$0xff] %v771_v49  ;;  %991 = vst [vmem:[%s1927_s7 + $0x60] sm:$0xff] %v781_v55  ;;  %v795_v23 = vmul.f32 %v1903_v57, %v739_v17  ;;  %v796_v29 = vmul.f32 %v1906_v2, %v740_v18  ;;  %v805_v52 = vmul.f32 %v1910_v25, %v737_v3 }
  0xc1   : > { %752 = vst [vmem:[%s1927_s7 + $0x18] sm:$0xff] %v748_v60  ;;  %978 = vst [vmem:[%s1927_s7 + $0x38] sm:$0xff] %v760_v62  ;;  %v806_v26 = vmul.f32 %v1912_v40, %v738_v33  ;;  %v807_v27 = vmul.f32 %v1916_v36, %v739_v17  ;;  %v808_v37 = vmul.f32 %v1919_v30, %v740_v18 }
  0xc2   : > { %986 = vst [vmem:[%s1927_s7 + $0x58] sm:$0xff] %v772_v59  ;;  %992 = vst [vmem:[%s1927_s7 + $0x68] sm:$0xff] %v782_v14 }
  0xc3   : > { %993 = vst [vmem:[%s1927_s7 + $0x70] sm:$0xff] %v783_v4  ;;  %994 = vst [vmem:[%s1927_s7 + $0x78] sm:$0xff] %v784_v9 }
  0xc4   : > { %999 = vst [vmem:[%s1927_s7 + $0x80] sm:$0xff] %v793_v24  ;;  %1000 = vst [vmem:[%s1927_s7 + $0x88] sm:$0xff] %v794_v53 }
  0xc5   : > { %1001 = vst [vmem:[%s1927_s7 + $0x90] sm:$0xff] %v795_v23  ;;  %1002 = vst [vmem:[%s1927_s7 + $0x98] sm:$0xff] %v796_v29 }
  0xc6   : > { %1007 = vst [vmem:[%s1927_s7 + $0xa0] sm:$0xff] %v805_v52  ;;  %1008 = vst [vmem:[%s1927_s7 + $0xa8] sm:$0xff] %v806_v26 }
  0xc7   : > { %1009 = vst [vmem:[%s1927_s7 + $0xb0] sm:$0xff] %v807_v27  ;;  %1010 = vst [vmem:[%s1927_s7 + $0xb8] sm:$0xff] %v808_v37 }
  0xc8 PF: > { %s16_s17 = sadd.s32 1, %s1213_s17   ;;  %s2015_s15 = smov %s1209_s16 }
  0xc9   : > { %p13_p3 = scmp.ge.s32.totalorder %s16_s17, 4   ;;  %s2016_s16 = smov %s2018_s25 }
  0xcb   :  { %15 = sbr.rel (!%p13_p3) target bundleno = 3 (0x3), region = 84 }
  0xd0   :  { %843 = vsyncpa [#allocation3], 1 }
  0xd1   :  { %845 = vsyncpa [#allocation3 + $0x1], 1 }
  0xd2   :  { %846 = vsyncpa [#allocation5], 1 }

</bundles_post_ra>
